<compile_context>
chip_gen: v7x
topology: tpu7x:2x2x1
jax: 0.10.0
libtpu: 0.0.40
codegen_flags: <defaults>
</compile_context>

<pallas_src>
from functools import partial

import jax
import jax.numpy as jnp
from jax import lax
from jax.experimental import pallas as pl
from jax.experimental.pallas import tpu as pltpu


def fire_kernel(x_ref, masks_ref, wsq_ref, bsq_ref, wexp_ref, bexp_ref,
                out_ref, *, W, TH):
    # x_ref    : (1, (Hp+2)*W, Cin) bf16  zero-padded (1 top row, >=1 bottom),
    #                                     spatially flattened
    # masks_ref: ((Hp+2)*W, 3)      f32   [row-valid, col != 0, col != W-1]
    # wsq_ref  : (Cin, Csq)  bf16         bsq_ref : (1, Csq)  f32
    # wexp_ref : (9*Csq, Cout) bf16       bexp_ref: (1, Cout) f32
    # out_ref  : (1, TH*W, Cout) bf16
    Csq = wsq_ref.shape[1]
    L = (TH + 2) * W          # flattened rows of the halo'd window
    M = TH * W                # flattened rows of this output tile

    i = pl.program_id(1)
    start = pl.multiple_of(i * M, M)      # window start (multiple of 8*W)

    # --- squeeze: 1x1 conv + bias + ReLU over the TH+2-row window (MXU).
    xw = x_ref[0, pl.ds(start, L), :]                                 # (L, Cin)
    sq = jnp.dot(xw, wsq_ref[...], preferred_element_type=jnp.float32)
    sq = jnp.maximum(sq + bsq_ref[...], 0.0)                          # (L, Csq)

    # --- precomputed masks (no in-kernel iota / div / mod).
    mw = masks_ref[pl.ds(start, L), :]                                # (L, 3)

    # dx = 0 / -1 / +1 sources.  Row mask zero-pads the squeeze output at the
    # image top/bottom; the two column masks kill the roll wrap-around.
    sq_c_f = sq * mw[:, 0:1]                                          # f32
    sq_c = sq_c_f.astype(jnp.bfloat16)
    # roll(x, s)[p] = x[p - s]; rolls kept f32 (packed-sublane-rotate safety).
    sq_m1 = (pltpu.roll(sq_c_f, shift=1, axis=0) * mw[:, 1:2]).astype(jnp.bfloat16)
    sq_p1 = (pltpu.roll(sq_c_f, shift=L - 1, axis=0) * mw[:, 2:3]).astype(jnp.bfloat16)

    # --- im2col: nine static length-M sublane slices -> one wide-K operand.
    srcs = (sq_m1, sq_c, sq_p1)            # indexed by dx + 1
    taps = []
    for dy in (-1, 0, 1):
        base = (1 + dy) * W
        for dx in (-1, 0, 1):
            taps.append(srcs[dx + 1][base:base + M])
    x9 = jnp.concatenate(taps, axis=-1)                               # (M, 9*Csq)

    # --- single fused expand matmul: [expand1x1 | expand3x3] in one MXU push,
    # one bias add, one ReLU, one lane-dense bf16 store.
    acc = jnp.dot(x9, wexp_ref[...], preferred_element_type=jnp.float32)
    out = jnp.maximum(acc + bexp_ref[...], 0.0)
    out_ref[0] = out.astype(out_ref.dtype)


def fire_forward(x_nchw, wsq, bsq, we1, be1, we3, be3, *, row_tile=32):
    """Fire forward. Inputs use PyTorch conventions (NCHW / OIHW weights)."""
    N, Cin, H, W = x_nchw.shape
    Csq = wsq.shape[0]
    Ce1 = we1.shape[0]
    Ce3 = we3.shape[0]
    Cout = Ce1 + Ce3

    assert row_tile % 8 == 0
    TH = min(row_tile, ((H + 7) // 8) * 8)   # row tile, multiple of 8
    n_tiles = pl.cdiv(H, TH)
    Hp = n_tiles * TH                        # H padded to a multiple of TH
    P = (Hp + 2) * W                         # flattened padded-image rows
    L = (TH + 2) * W
    M = TH * W

    # Cast to bf16 BEFORE the layout transpose (halves transpose traffic),
    # add the 1-row top halo + bottom halo/tail pad, flatten spatial dims.
    x = jnp.transpose(x_nchw.astype(jnp.bfloat16), (0, 2, 3, 1))      # NHWC
    x = jnp.pad(x, ((0, 0), (1, 1 + Hp - H), (0, 0), (0, 0)))
    x = x.reshape(N, P, Cin)

    # Boundary masks, flattened like x (tiny; replaces in-kernel iota/div/mod):
    #   col 0: padded row lies inside the real image
    #   col 1: not the first column (dx = -1 rolled tap)
    #   col 2: not the last  column (dx = +1 rolled tap)
    rows = jnp.arange(Hp + 2)
    cols = jnp.arange(W)
    m_row = jnp.broadcast_to(((rows >= 1) & (rows <= H)).astype(jnp.float32)[:, None],
                             (Hp + 2, W)).reshape(P)
    m_nl = jnp.broadcast_to((cols != 0).astype(jnp.float32)[None, :],
                            (Hp + 2, W)).reshape(P)
    m_nr = jnp.broadcast_to((cols != W - 1).astype(jnp.float32)[None, :],
                            (Hp + 2, W)).reshape(P)
    masks = jnp.stack([m_row, m_nl, m_nr], axis=1)                    # (P, 3) f32

    # Weights -> matmul layouts. The expand stage is ONE (9*Csq, Cout) matrix:
    # block (ky,kx) holds the 3x3 tap; the center block also carries the
    # expand1x1 weights in its first Ce1 output columns.
    wsq_m = jnp.transpose(wsq[:, :, 0, 0], (1, 0)).astype(jnp.bfloat16)     # (Cin, Csq)
    we1_m = jnp.transpose(we1[:, :, 0, 0], (1, 0))                          # (Csq, Ce1)
    w_t = jnp.transpose(we3, (2, 3, 1, 0))                                  # (3,3,Csq,Ce3)
    zeros_e1 = jnp.zeros((Csq, Ce1), we3.dtype)
    blocks = []
    for ky in range(3):
        for kx in range(3):
            left = we1_m if (ky == 1 and kx == 1) else zeros_e1
            blocks.append(jnp.concatenate([left, w_t[ky, kx]], axis=1))
    wexp_m = jnp.concatenate(blocks, axis=0).astype(jnp.bfloat16)           # (9*Csq, Cout)
    bsq_m = bsq.reshape(1, Csq).astype(jnp.float32)
    bexp_m = jnp.concatenate([be1, be3]).reshape(1, Cout).astype(jnp.float32)

    # Raise the scoped VMEM limit only when the tiling actually needs it
    # (keeps the v5e 16 MiB / v7x 64 MiB-per-TC budgets safe otherwise).
    est = (2 * P * Cin * 2 + 2 * M * Cout * 2 + P * 3 * 4
           + (Cin * Csq + 9 * Csq * Cout) * 2 + (Csq + Cout) * 4
           + 8 * L * max(9 * Csq, Cout) * 2)
    vmem_limit = None
    if est > 24 * 1024 * 1024:
        vmem_limit = int(min(max(2 * est, 32 * 1024 * 1024), 64 * 1024 * 1024))

    out_flat = pl.pallas_call(
        partial(fire_kernel, W=W, TH=TH),
        out_shape=jax.ShapeDtypeStruct((N, Hp * W, Cout), jnp.bfloat16),
        grid_spec=pltpu.PrefetchScalarGridSpec(
            num_scalar_prefetch=0,
            grid=(N, n_tiles),
            in_specs=[
                # Whole padded image per batch; constant block index across
                # the row-tile axis -> fetched once per batch.
                pl.BlockSpec((1, P, Cin), lambda b, i: (b, 0, 0)),
                pl.BlockSpec((P, 3), lambda b, i: (0, 0)),
                pl.BlockSpec((Cin, Csq), lambda b, i: (0, 0)),
                pl.BlockSpec((1, Csq), lambda b, i: (0, 0)),
                pl.BlockSpec((9 * Csq, Cout), lambda b, i: (0, 0)),
                pl.BlockSpec((1, Cout), lambda b, i: (0, 0)),
            ],
            out_specs=pl.BlockSpec((1, M, Cout), lambda b, i: (b, i, 0)),
        ),
        compiler_params=pltpu.CompilerParams(
            dimension_semantics=("parallel", "parallel"),
            vmem_limit_bytes=vmem_limit),
    )(x, masks, wsq_m, bsq_m, wexp_m, bexp_m)

    # Drop the H tail pad, NHWC -> NCHW while still bf16, then restore the
    # module's f32 interface.
    out = out_flat[:, :H * W, :].reshape(N, H, W, Cout)
    return jnp.transpose(out, (0, 3, 1, 2)).astype(jnp.float32)


def fire_ref(x, wsq, bsq, we1, be1, we3, be3):
    """Pure-JAX f32 reference (matches the PyTorch module)."""
    def conv(inp, w, b, pad):
        y = jax.lax.conv_general_dilated(
            inp, w, window_strides=(1, 1),
            padding=((pad, pad), (pad, pad)),
            dimension_numbers=("NCHW", "OIHW", "NCHW"))
        return y + b.reshape(1, -1, 1, 1)

    s = jax.nn.relu(conv(x, wsq, bsq, 0))
    e1 = jax.nn.relu(conv(s, we1, be1, 0))
    e3 = jax.nn.relu(conv(s, we3, be3, 1))
    return jnp.concatenate([e1, e3], axis=1)


if __name__ == "__main__":
    # Small Fire config: inplanes=4, squeeze=8, expand1x1=16, expand3x3=16
    N, Cin, H, W = 2, 4, 16, 16
    Csq, Ce1, Ce3 = 8, 16, 16

    key = jax.random.PRNGKey(0)
    kx, k1, k2, k3, k4, k5, k6 = jax.random.split(key, 7)

    x = jax.random.normal(kx, (N, Cin, H, W), jnp.float32)
    wsq = jax.random.normal(k1, (Csq, Cin, 1, 1), jnp.float32) * 0.1
    bsq = jax.random.normal(k2, (Csq,), jnp.float32) * 0.1
    we1 = jax.random.normal(k3, (Ce1, Csq, 1, 1), jnp.float32) * 0.1
    be1 = jax.random.normal(k4, (Ce1,), jnp.float32) * 0.1
    we3 = jax.random.normal(k5, (Ce3, Csq, 3, 3), jnp.float32) * 0.1
    be3 = jax.random.normal(k6, (Ce3,), jnp.float32) * 0.1

    out = fire_forward(x, wsq, bsq, we1, be1, we3, be3)
    out = jax.block_until_ready(out)

    ref = fire_ref(x, wsq, bsq, we1, be1, we3, be3)
    assert out.shape == (N, Ce1 + Ce3, H, W), out.shape
    # bf16 matmul operands + bf16 kernel output (f32 accumulation) -> loosened
    # tolerance vs the f32 reference; acceptable for inference.
    assert jnp.allclose(out, ref, atol=4e-2, rtol=4e-2), float(
        jnp.max(jnp.abs(out - ref)))

    print("KERNEL_OK")
</pallas_src>

<mosaic_0001>
module attributes {stable_mosaic.version = 11 : i64} {
  func.func @fire_kernel(%arg0: i32, %arg1: i32, %arg2: memref<1x288x4xbf16, #tpu.memory_space<vmem>>, %arg3: memref<288x3xf32, #tpu.memory_space<vmem>>, %arg4: memref<4x8xbf16, #tpu.memory_space<vmem>>, %arg5: memref<1x8xf32, #tpu.memory_space<vmem>>, %arg6: memref<72x32xbf16, #tpu.memory_space<vmem>>, %arg7: memref<1x32xf32, #tpu.memory_space<vmem>>, %arg8: memref<1x256x32xbf16, #tpu.memory_space<vmem>>) attributes {dimension_semantics = [#tpu.dimension_semantics<parallel>, #tpu.dimension_semantics<parallel>], iteration_bounds = array<i64: 2, 1>, scalar_prefetch = 0 : i64, scratch_operands = 0 : i64, tpu.core_type = #tpu.core_type<tc>, window_params = [{transform_indices = @transform_0, window_bounds = array<i64: 1, 288, 4>}, {pipeline_mode = #tpu.pipeline_mode<synchronous>, transform_indices = @transform_1, window_bounds = array<i64: 288, 3>}, {pipeline_mode = #tpu.pipeline_mode<synchronous>, transform_indices = @transform_2, window_bounds = array<i64: 4, 8>}, {pipeline_mode = #tpu.pipeline_mode<synchronous>, transform_indices = @transform_3, window_bounds = array<i64: 1, 8>}, {pipeline_mode = #tpu.pipeline_mode<synchronous>, transform_indices = @transform_4, window_bounds = array<i64: 72, 32>}, {pipeline_mode = #tpu.pipeline_mode<synchronous>, transform_indices = @transform_5, window_bounds = array<i64: 1, 32>}, {transform_indices = @transform_6, window_bounds = array<i64: 1, 256, 32>}]} {
    %c256_i32 = arith.constant 256 : i32
    %0 = arith.muli %arg1, %c256_i32 : i32
    %1 = tpu.assume_multiple %0, 256 : i32
    %c0 = arith.constant 0 : index
    %2 = arith.index_cast %1 : i32 to index
    %c0_0 = arith.constant 0 : index
    %3 = vector.load %arg2[%c0, %2, %c0_0] : memref<1x288x4xbf16, #tpu.memory_space<vmem>>, vector<1x288x4xbf16>
    %4 = vector.shape_cast %3 : vector<1x288x4xbf16> to vector<288x4xbf16>
    %c0_1 = arith.constant 0 : index
    %c0_2 = arith.constant 0 : index
    %5 = vector.load %arg4[%c0_1, %c0_2] : memref<4x8xbf16, #tpu.memory_space<vmem>>, vector<4x8xbf16>
    %cst = arith.constant dense<0.000000e+00> : vector<288x8xf32>
    %6 = tpu.matmul %4, %5, %cst {dimension_numbers = #tpu.dot_dimension_numbers<[1], [0], [0], [1], [0, 0, 1, 1], [], []>} : vector<288x4xbf16>, vector<4x8xbf16>, vector<288x8xf32> -> vector<288x8xf32>
    %c0_3 = arith.constant 0 : index
    %c0_4 = arith.constant 0 : index
    %7 = vector.load %arg5[%c0_3, %c0_4] : memref<1x8xf32, #tpu.memory_space<vmem>>, vector<1x8xf32>
    %8 = vector.broadcast %7 : vector<1x8xf32> to vector<288x8xf32>
    %9 = arith.addf %6, %8 : vector<288x8xf32>
    %cst_5 = arith.constant 0.000000e+00 : f32
    %10 = vector.broadcast %cst_5 : f32 to vector<288x8xf32>
    %11 = arith.maximumf %9, %10 : vector<288x8xf32>
    %12 = arith.index_cast %1 : i32 to index
    %c0_6 = arith.constant 0 : index
    %13 = vector.load %arg3[%12, %c0_6] : memref<288x3xf32, #tpu.memory_space<vmem>>, vector<288x3xf32>
    %14 = vector.extract_strided_slice %13 {offsets = [0, 0], sizes = [288, 1], strides = [1, 1]} : vector<288x3xf32> to vector<288x1xf32>
    %15 = vector.broadcast %14 : vector<288x1xf32> to vector<288x8xf32>
    %16 = arith.mulf %11, %15 : vector<288x8xf32>
    %17 = arith.truncf %16 : vector<288x8xf32> to vector<288x8xbf16>
    %c1_i32 = arith.constant 1 : i32
    %18 = tpu.dynamic_rotate %16 by %c1_i32 dim 0 : vector<288x8xf32>, i32 -> vector<288x8xf32>
    %19 = vector.extract_strided_slice %13 {offsets = [0, 1], sizes = [288, 1], strides = [1, 1]} : vector<288x3xf32> to vector<288x1xf32>
    %20 = vector.broadcast %19 : vector<288x1xf32> to vector<288x8xf32>
    %21 = arith.mulf %18, %20 : vector<288x8xf32>
    %22 = arith.truncf %21 : vector<288x8xf32> to vector<288x8xbf16>
    %c287_i32 = arith.constant 287 : i32
    %23 = tpu.dynamic_rotate %16 by %c287_i32 dim 0 : vector<288x8xf32>, i32 -> vector<288x8xf32>
    %24 = vector.extract_strided_slice %13 {offsets = [0, 2], sizes = [288, 1], strides = [1, 1]} : vector<288x3xf32> to vector<288x1xf32>
    %25 = vector.broadcast %24 : vector<288x1xf32> to vector<288x8xf32>
    %26 = arith.mulf %23, %25 : vector<288x8xf32>
    %27 = arith.truncf %26 : vector<288x8xf32> to vector<288x8xbf16>
    %28 = vector.extract_strided_slice %22 {offsets = [0, 0], sizes = [256, 8], strides = [1, 1]} : vector<288x8xbf16> to vector<256x8xbf16>
    %29 = vector.extract_strided_slice %17 {offsets = [0, 0], sizes = [256, 8], strides = [1, 1]} : vector<288x8xbf16> to vector<256x8xbf16>
    %30 = vector.extract_strided_slice %27 {offsets = [0, 0], sizes = [256, 8], strides = [1, 1]} : vector<288x8xbf16> to vector<256x8xbf16>
    %31 = vector.extract_strided_slice %22 {offsets = [16, 0], sizes = [256, 8], strides = [1, 1]} : vector<288x8xbf16> to vector<256x8xbf16>
    %32 = vector.extract_strided_slice %17 {offsets = [16, 0], sizes = [256, 8], strides = [1, 1]} : vector<288x8xbf16> to vector<256x8xbf16>
    %33 = vector.extract_strided_slice %27 {offsets = [16, 0], sizes = [256, 8], strides = [1, 1]} : vector<288x8xbf16> to vector<256x8xbf16>
    %34 = vector.extract_strided_slice %22 {offsets = [32, 0], sizes = [256, 8], strides = [1, 1]} : vector<288x8xbf16> to vector<256x8xbf16>
    %35 = vector.extract_strided_slice %17 {offsets = [32, 0], sizes = [256, 8], strides = [1, 1]} : vector<288x8xbf16> to vector<256x8xbf16>
    %36 = vector.extract_strided_slice %27 {offsets = [32, 0], sizes = [256, 8], strides = [1, 1]} : vector<288x8xbf16> to vector<256x8xbf16>
    %37 = tpu.concatenate %28, %29, %30, %31, %32, %33, %34, %35, %36 in 1 : vector<256x8xbf16>, vector<256x8xbf16>, vector<256x8xbf16>, vector<256x8xbf16>, vector<256x8xbf16>, vector<256x8xbf16>, vector<256x8xbf16>, vector<256x8xbf16>, vector<256x8xbf16> -> vector<256x72xbf16>
    %c0_7 = arith.constant 0 : index
    %c0_8 = arith.constant 0 : index
    %38 = vector.load %arg6[%c0_7, %c0_8] : memref<72x32xbf16, #tpu.memory_space<vmem>>, vector<72x32xbf16>
    %cst_9 = arith.constant dense<0.000000e+00> : vector<256x32xf32>
    %39 = tpu.matmul %37, %38, %cst_9 {dimension_numbers = #tpu.dot_dimension_numbers<[1], [0], [0], [1], [0, 0, 1, 1], [], []>} : vector<256x72xbf16>, vector<72x32xbf16>, vector<256x32xf32> -> vector<256x32xf32>
    %c0_10 = arith.constant 0 : index
    %c0_11 = arith.constant 0 : index
    %40 = vector.load %arg7[%c0_10, %c0_11] : memref<1x32xf32, #tpu.memory_space<vmem>>, vector<1x32xf32>
    %41 = vector.broadcast %40 : vector<1x32xf32> to vector<256x32xf32>
    %42 = arith.addf %39, %41 : vector<256x32xf32>
    %cst_12 = arith.constant 0.000000e+00 : f32
    %43 = vector.broadcast %cst_12 : f32 to vector<256x32xf32>
    %44 = arith.maximumf %42, %43 : vector<256x32xf32>
    %45 = arith.truncf %44 : vector<256x32xf32> to vector<256x32xbf16>
    %c0_13 = arith.constant 0 : index
    %c0_14 = arith.constant 0 : index
    %c0_15 = arith.constant 0 : index
    %46 = vector.load %arg8[%c0_13, %c0_14, %c0_15] : memref<1x256x32xbf16, #tpu.memory_space<vmem>>, vector<1x256x32xbf16>
    %47 = vector.shape_cast %46 : vector<1x256x32xbf16> to vector<256x32xbf16>
    %48 = vector.shape_cast %45 : vector<256x32xbf16> to vector<1x256x32xbf16>
    tpu.vector_store %arg8[%c0_13, %c0_14, %c0_15], %48 {strides = array<i32>} : memref<1x256x32xbf16, #tpu.memory_space<vmem>>, vector<1x256x32xbf16>,
    return
  }
  func.func @transform_0(%arg0: i32, %arg1: i32) -> (i32, i32, i32) {
    %c0_i32 = arith.constant 0 : i32
    %c0_i32_0 = arith.constant 0 : i32
    %c0_i32_1 = arith.constant 0 : i32
    return %arg0, %c0_i32, %c0_i32_0 : i32, i32, i32
  }
  func.func @transform_1(%arg0: i32, %arg1: i32) -> (i32, i32) {
    %c0_i32 = arith.constant 0 : i32
    %c0_i32_0 = arith.constant 0 : i32
    %c0_i32_1 = arith.constant 0 : i32
    return %c0_i32, %c0_i32_0 : i32, i32
  }
  func.func @transform_2(%arg0: i32, %arg1: i32) -> (i32, i32) {
    %c0_i32 = arith.constant 0 : i32
    %c0_i32_0 = arith.constant 0 : i32
    %c0_i32_1 = arith.constant 0 : i32
    return %c0_i32, %c0_i32_0 : i32, i32
  }
  func.func @transform_3(%arg0: i32, %arg1: i32) -> (i32, i32) {
    %c0_i32 = arith.constant 0 : i32
    %c0_i32_0 = arith.constant 0 : i32
    %c0_i32_1 = arith.constant 0 : i32
    return %c0_i32, %c0_i32_0 : i32, i32
  }
  func.func @transform_4(%arg0: i32, %arg1: i32) -> (i32, i32) {
    %c0_i32 = arith.constant 0 : i32
    %c0_i32_0 = arith.constant 0 : i32
    %c0_i32_1 = arith.constant 0 : i32
    return %c0_i32, %c0_i32_0 : i32, i32
  }
  func.func @transform_5(%arg0: i32, %arg1: i32) -> (i32, i32) {
    %c0_i32 = arith.constant 0 : i32
    %c0_i32_0 = arith.constant 0 : i32
    %c0_i32_1 = arith.constant 0 : i32
    return %c0_i32, %c0_i32_0 : i32, i32
  }
  func.func @transform_6(%arg0: i32, %arg1: i32) -> (i32, i32, i32) {
    %c0_i32 = arith.constant 0 : i32
    %c0_i32_0 = arith.constant 0 : i32
    return %arg0, %arg1, %c0_i32 : i32, i32, i32
  }
}

</mosaic_0001>

<bundles_post_ra>
// kernel: tpu_custom_call.1
= control target key start
LH: loop header
LB: loop body
LE: loop exit
PB: predicated region body
PF: predicated region fallthrough
CT: control target
= control target key end

     0   :  { %s3005_s21 = smov 0   ;;  %s3007_s22 = smov 0   ;;  %s4768_s0 = inlined_call_operand.vmem [shape: bf16[2,288,4], index: 0, kind: input, shape index: {}]   ;;  %s4769_s1 = inlined_call_operand.vmem [shape: f32[288,3], index: 1, kind: input, shape index: {}]   ;;  %s4770_s2 = inlined_call_operand.vmem [shape: bf16[4,8], index: 2, kind: input, shape index: {}]   ;;  %s4771_s3 = inlined_call_operand.vmem [shape: f32[1,8], index: 3, kind: input, shape index: {}]   ;;  %s4772_s4 = inlined_call_operand.vmem [shape: bf16[72,32], index: 4, kind: input, shape index: {}]   ;;  %s4773_s5 = inlined_call_operand.vmem [shape: f32[1,32], index: 5, kind: input, shape index: {}]   ;;  %s4774_s6 = inlined_call_operand.vmem [shape: bf16[2,256,32], index: 6, kind: output, shape index: {}]  }
   0x1   :  { %s3009_s23 = smov 0  }
   0x2 LB: > { %s28_s24 = sadd.s32 1, %s2953_s22  ;;  %p2614_p0 = scmp.ge.s32.totalorder %s2957_s23, 1  ;;  %s2957_s23 = sphi %s3009_s23, %s16_s23   ;;  %s2953_s22 = sphi %s3007_s22, %s4931_s22   ;;  %s2949_s21 = sphi %s3005_s21, %s4930_s21  }
   0x3   : > { %p30_p1 = scmp.ge.s32.totalorder %s28_s24, 2  ;;  %p226_p2 = scmp.lt.s32.totalorder %s2957_s23, 3 }
   0x5   : > { %s4933_s24 = smov (%p30_p1, %s28_s24), 0  ;;  %p227_p3 = pnand %p2614_p0, %p226_p2 }
   0x7   : > { %230 = sbr.rel (%p227_p3) target bundleno = 877 (0x36d), region = 44 }
   0xe   : > { %v3026_v0 = vld [vmem:[%s4769_s1 + $0x10] sm:$0xff]  ;;  %v3031_v1 = vld [vmem:[%s4769_s1] sm:$0xff]  ;;  %vm470_vm0 = vcmask 1041408   ;;  %p260_p4 = scmp.lt.s32.totalorder %s2949_s21, 1  ;;  %v2959_v2 = vmov 0   ;;  %v3043_v5 = vld [vmem:[%s4769_s1 + $0x18] sm:$0xff] }
   0xf   : > { %2903 = vset.pattern.permute.xlu1 %v2959_v2  ;;  %2902 = vset.pattern.permute.xlu0 %v2959_v2  ;;  %v317_v3 = vld [vmem:[%s4770_s2] sm:$0x3]  ;;  %v3048_v6 = vld [vmem:[%s4769_s1 + $0x8] sm:$0xff]  ;;  %vm415_vm1 = vcmask 31744   ;;  %v3077_v12 = vld [vmem:[%s4769_s1 + $0x38] sm:$0xff]  ;;  %v2960_v57 = vmov 1  }
  0x10   : > { %736 = vperm.xlu1 %2903, %v3026_v0   ;;  %726 = vperm.xlu0 %2902, %v3031_v1   ;;  %v472_v4 = vsel %vm470_vm0, %v317_v3, 0  ;;  %s4935_s21 = smov (!%p260_p4, %s2949_s21), 1  ;;  %v3056_v7 = vld [vmem:[%s4769_s1 + $0x28] sm:$0xff]  ;;  %v3061_v8 = vld [vmem:[%s4769_s1 + $0x20] sm:$0xff]  ;;  %v3083_v13 = vld [vmem:[%s4769_s1 + $0x30] sm:$0xff]  ;;  %s2962_s27 = smov 32  }
  0x11   : > { %2864 = vmatprep.subr.msk.bf16.mxu0 %vm470_vm0, %v317_v3  ;;  %s2866_s11 = smul.u32 144, %s4935_s21  ;;  %v3091_v14 = vld [vmem:[%s4769_s1 + $0x48] sm:$0xff]  ;;  %v3096_v15 = vld [vmem:[%s4769_s1 + $0x40] sm:$0xff]  ;;  %v3105_v18 = vld [vmem:[%s4769_s1 + $0x58] sm:$0xff]  ;;  %s2963_s28 = smov 8   ;;  %vm2167_vm4 = vcmask 1043456  }
  0x12   : > { %2785 = vmatpush3.bf16.msra.mxu0 %v472_v4  ;;  %v3111_v19 = vld [vmem:[%s4769_s1 + $0x50] sm:$0xff]  ;;  %v3117_v20 = vld [vmem:[%s4769_s1 + $0x68] sm:$0xff]  ;;  %v3124_v21 = vld [vmem:[%s4769_s1 + $0x60] sm:$0xff]  ;;  %v2961_v4 = vmov 2   ;;  %s2965_s14 = smov 24   ;;  %s2966_s15 = smov 40  }
  0x13   : > { %s3066_s18 = scalar_lea.vmem %s4768_s0, %s2866_s11  ;;  %v3134_v24 = vld [vmem:[%s4769_s1 + $0x78] sm:$0xff]  ;;  %v3139_v25 = vld [vmem:[%s4769_s1 + $0x70] sm:$0xff]  ;;  %v3145_v26 = vld [vmem:[%s4769_s1 + $0x88] sm:$0xff]  ;;  %s2964_s11 = smov 16   ;;  %vm1860_vm5 = vcmask 130048   ;;  %vm1811_vm6 = vcmask 64512  }
  0x14   : > { %741 = vperm.xlu1 %2903, %v3043_v5   ;;  %731 = vperm.xlu0 %2902, %v3048_v6   ;;  %v2912_v9 = vld [vmem:[%s3066_s18] sm:$0xff]   ;;  %v2913_v10 = vld [vmem:[%s3066_s18 + $0x8] sm:$0xff]   ;;  %v2914_v11 = vld [vmem:[%s3066_s18 + $0x10] sm:$0xff]   ;;  %s2967_s16 = smov 48   ;;  %s2968_s17 = smov 56   ;;  %vm1893_vm7 = vcmask 195584  }
  0x15   : > { %2786 = vmatprep.mubr.msk.bf16.mxu0 %vm415_vm1, %v2912_v9  ;;  %v2915_v16 = vld [vmem:[%s3066_s18 + $0x18] sm:$0xff]   ;;  %v2916_v17 = vld [vmem:[%s3066_s18 + $0x20] sm:$0xff]   ;;  %v2917_v22 = vld [vmem:[%s3066_s18 + $0x28] sm:$0xff]   ;;  %s2969_s19 = smov 64   ;;  %vm1926_vm8 = vcmask 261120   ;;  %vm1959_vm9 = vcmask 326656  }
  0x16   : > { %2787 = vmatmul.mubr.msk.bf16.vlgmr.msra.gmra.mrb[0].mxu0 %vm415_vm1, %v2913_v10  ;;  %v2918_v23 = vld [vmem:[%s3066_s18 + $0x30] sm:$0xff]   ;;  %v3150_v27 = vld [vmem:[%s4769_s1 + $0x80] sm:$0xff]  ;;  %v2919_v28 = vld [vmem:[%s3066_s18 + $0x38] sm:$0xff]   ;;  %vm1992_vm10 = vcmask 392192   ;;  %vm2025_vm11 = vcmask 457728   ;;  %vm2058_vm12 = vcmask 523264  }
  0x17   : > { %2790 = vmatprep.mubr.msk.bf16.mxu0 %vm415_vm1, %v2914_v11  ;;  %v2920_v29 = vld [vmem:[%s3066_s18 + $0x40] sm:$0xff]   ;;  %v3162_v30 = vld [vmem:[%s4769_s1 + $0x98] sm:$0xff]  ;;  %v3167_v31 = vld [vmem:[%s4769_s1 + $0x90] sm:$0xff]  ;;  %vm2134_vm13 = vcmask 588800   ;;  %vm2492_vm14 = vcmask 257024  }
  0x18   : > { %751 = vperm.xlu1 %2903, %v3056_v7   ;;  %746 = vperm.xlu0 %2902, %v3061_v8   ;;  %v3175_v32 = vld [vmem:[%s4769_s1 + $0xa8] sm:$0xff]  ;;  %v3180_v33 = vld [vmem:[%s4769_s1 + $0xa0] sm:$0xff]  ;;  %v2922_v35 = vld [vmem:[%s3066_s18 + $0x50] sm:$0xff]  }
  0x19   : > { %v2921_v34 = vld [vmem:[%s3066_s18 + $0x48] sm:$0xff]   ;;  %v3190_v36 = vld [vmem:[%s4769_s1 + $0xb8] sm:$0xff]  ;;  %v3195_v37 = vld [vmem:[%s4769_s1 + $0xb0] sm:$0xff] }
  0x1a   : > { %v3203_v38 = vld [vmem:[%s4769_s1 + $0xc8] sm:$0xff]  ;;  %v3208_v39 = vld [vmem:[%s4769_s1 + $0xc0] sm:$0xff]  ;;  %v2923_v40 = vld [vmem:[%s3066_s18 + $0x58] sm:$0xff]  }
  0x1b   : > { %v2924_v41 = vld [vmem:[%s3066_s18 + $0x60] sm:$0xff]   ;;  %v3218_v42 = vld [vmem:[%s4769_s1 + $0xd8] sm:$0xff]  ;;  %v3223_v43 = vld [vmem:[%s4769_s1 + $0xd0] sm:$0xff] }
  0x1c   : > { %761 = vperm.xlu1 %2903, %v3077_v12   ;;  %756 = vperm.xlu0 %2902, %v3083_v13   ;;  %v3231_v44 = vld [vmem:[%s4769_s1 + $0xe8] sm:$0xff]  ;;  %v3236_v45 = vld [vmem:[%s4769_s1 + $0xe0] sm:$0xff]  ;;  %v2926_v47 = vld [vmem:[%s3066_s18 + $0x70] sm:$0xff]  }
  0x1d   : > { %v2925_v46 = vld [vmem:[%s3066_s18 + $0x68] sm:$0xff]   ;;  %v3246_v48 = vld [vmem:[%s4769_s1 + $0xf8] sm:$0xff]  ;;  %v3251_v49 = vld [vmem:[%s4769_s1 + $0xf0] sm:$0xff] }
  0x1e   : > { %2791 = vmatmul.mubr.msk.bf16.gmra.mrb[4].mxu0 %vm415_vm1, %v2915_v16  ;;  %v3259_v50 = vld [vmem:[%s4769_s1 + $0x108] sm:$0xff]  ;;  %v3264_v51 = vld [vmem:[%s4769_s1 + $0x100] sm:$0xff]  ;;  %v2927_v52 = vld [vmem:[%s3066_s18 + $0x78] sm:$0xff]  }
  0x1f   : > { %2794 = vmatprep.mubr.msk.bf16.mxu0 %vm415_vm1, %v2916_v17  ;;  %v2928_v53 = vld [vmem:[%s3066_s18 + $0x80] sm:$0xff]   ;;  %v3274_v54 = vld [vmem:[%s4769_s1 + $0x118] sm:$0xff]  ;;  %v3279_v55 = vld [vmem:[%s4769_s1 + $0x110] sm:$0xff] }
  0x20   : > { %771 = vperm.xlu1 %2903, %v3091_v14   ;;  %766 = vperm.xlu0 %2902, %v3096_v15   ;;  %v2929_v56 = vld [vmem:[%s3066_s18 + $0x88] sm:$0xff]  }
  0x24   : > { %781 = vperm.xlu1 %2903, %v3105_v18   ;;  %776 = vperm.xlu0 %2902, %v3111_v19  }
  0x26   : > { %2795 = vmatmul.mubr.msk.bf16.gmra.mrb[8].mxu0 %vm415_vm1, %v2917_v22 }
  0x27   : > { %2798 = vmatprep.mubr.msk.bf16.mxu0 %vm415_vm1, %v2918_v23 }
  0x28   : > { %791 = vperm.xlu1 %2903, %v3117_v20   ;;  %786 = vperm.xlu0 %2902, %v3124_v21  }
  0x2c   : > { %801 = vperm.xlu1 %2903, %v3134_v24   ;;  %796 = vperm.xlu0 %2902, %v3139_v25  }
  0x2e   : > { %2799 = vmatmul.mubr.msk.bf16.gmra.mrb[12].mxu0 %vm415_vm1, %v2919_v28 }
  0x2f   : > { %2802 = vmatprep.mubr.msk.bf16.mxu0 %vm415_vm1, %v2920_v29 }
  0x30   : > { %811 = vperm.xlu1 %2903, %v3145_v26   ;;  %806 = vperm.xlu0 %2902, %v3150_v27  }
  0x34   : > { %821 = vperm.xlu1 %2903, %v3162_v30   ;;  %816 = vperm.xlu0 %2902, %v3167_v31  }
  0x36   : > { %2803 = vmatmul.mubr.msk.bf16.gmra.mrb[16].mxu0 %vm415_vm1, %v2921_v34 }
  0x37   : > { %2806 = vmatprep.mubr.msk.bf16.mxu0 %vm415_vm1, %v2922_v35 }
  0x38   : > { %831 = vperm.xlu1 %2903, %v3175_v32   ;;  %826 = vperm.xlu0 %2902, %v3180_v33  }
  0x3c   : > { %841 = vperm.xlu1 %2903, %v3190_v36   ;;  %836 = vperm.xlu0 %2902, %v3195_v37  }
  0x3e   : > { %2807 = vmatmul.mubr.msk.bf16.gmra.mrb[20].mxu0 %vm415_vm1, %v2923_v40 }
  0x3f   : > { %2810 = vmatprep.mubr.msk.bf16.mxu0 %vm415_vm1, %v2924_v41  ;;  %v3459_v41 = vld [vmem:[%s4771_s3] ss:$0 sm:$0xff] }
  0x40   : > { %851 = vperm.xlu1 %2903, %v3203_v38   ;;  %846 = vperm.xlu0 %2902, %v3208_v39  }
  0x44   : > { %861 = vperm.xlu1 %2903, %v3218_v42   ;;  %856 = vperm.xlu0 %2902, %v3223_v43  }
  0x46   : > { %2811 = vmatmul.mubr.msk.bf16.gmra.mrb[24].mxu0 %vm415_vm1, %v2925_v46 }
  0x47   : > { %2814 = vmatprep.mubr.msk.bf16.mxu0 %vm415_vm1, %v2926_v47 }
  0x48   : > { %871 = vperm.xlu1 %2903, %v3231_v44   ;;  %866 = vperm.xlu0 %2902, %v3236_v45  }
  0x4c   : > { %881 = vperm.xlu1 %2903, %v3246_v48   ;;  %876 = vperm.xlu0 %2902, %v3251_v49  }
  0x4e   : > { %2815 = vmatmul.mubr.msk.bf16.gmra.mrb[28].mxu0 %vm415_vm1, %v2927_v52 }
  0x4f   : > { %2818 = vmatprep.mubr.msk.bf16.mxu0 %vm415_vm1, %v2928_v53 }
  0x50   : > { %891 = vperm.xlu1 %2903, %v3259_v50   ;;  %886 = vperm.xlu0 %2902, %v3264_v51  }
  0x54   : > { %901 = vperm.xlu1 %2903, %v3274_v54   ;;  %896 = vperm.xlu0 %2902, %v3279_v55  }
  0x56   : > { %2819 = vmatmul.mubr.msk.bf16.gmra.mrb[32].mxu0 %vm415_vm1, %v2929_v56 }
  0x58   : > { %2905 = vset.pattern.permute.xlu1 %v2960_v57  ;;  %2904 = vset.pattern.permute.xlu0 %v2960_v57 }
  0x59   : > { %1038 = vperm.xlu1 %2905, %v3048_v6   ;;  %1034 = vperm.xlu0 %2904, %v3031_v1  }
  0x5d   : > { %1042 = vperm.xlu1 %2905, %v3026_v0   ;;  %1046 = vperm.xlu0 %2904, %v3043_v5  }
  0x61   : > { %1050 = vperm.xlu1 %2905, %v3061_v8   ;;  %1054 = vperm.xlu0 %2904, %v3056_v7  }
  0x65   : > { %1058 = vperm.xlu1 %2905, %v3083_v13   ;;  %1062 = vperm.xlu0 %2904, %v3077_v12  }
  0x69   : > { %1066 = vperm.xlu1 %2905, %v3096_v15   ;;  %1070 = vperm.xlu0 %2904, %v3091_v14  }
  0x6d   : > { %1074 = vperm.xlu1 %2905, %v3111_v19   ;;  %1078 = vperm.xlu0 %2904, %v3105_v18  }
  0x71   : > { %1082 = vperm.xlu1 %2905, %v3124_v21   ;;  %1086 = vperm.xlu0 %2904, %v3117_v20  }
  0x75   : > { %1090 = vperm.xlu1 %2905, %v3139_v25   ;;  %1094 = vperm.xlu0 %2904, %v3134_v24  }
  0x79   : > { %1098 = vperm.xlu1 %2905, %v3150_v27   ;;  %1102 = vperm.xlu0 %2904, %v3145_v26  }
  0x7d   : > { %1106 = vperm.xlu1 %2905, %v3167_v31   ;;  %1110 = vperm.xlu0 %2904, %v3162_v30  }
  0x81   : > { %1114 = vperm.xlu1 %2905, %v3180_v33   ;;  %1118 = vperm.xlu0 %2904, %v3175_v32  }
  0x85   : > { %1122 = vperm.xlu1 %2905, %v3195_v37   ;;  %1126 = vperm.xlu0 %2904, %v3190_v36  }
  0x89   : > { %1130 = vperm.xlu1 %2905, %v3208_v39   ;;  %1134 = vperm.xlu0 %2904, %v3203_v38  }
  0x8d   : > { %1138 = vperm.xlu1 %2905, %v3223_v43   ;;  %1142 = vperm.xlu0 %2904, %v3218_v42  }
  0x8f   : > { %v3316_v58 = vpop.permute.xlu1 %736  ;;  %v3318_v59 = vpop.permute.xlu0 %726 }
  0x91   : > { %1146 = vperm.xlu1 %2905, %v3236_v45   ;;  %1150 = vperm.xlu0 %2904, %v3231_v44  }
  0x93   : > { %v3322_v60 = vpop.permute.xlu1 %741  ;;  %v3324_v61 = vpop.permute.xlu0 %731 }
  0x95   : > { %1154 = vperm.xlu1 %2905, %v3251_v49   ;;  %1158 = vperm.xlu0 %2904, %v3246_v48  }
  0x97   : > { %v3328_v62 = vpop.permute.xlu1 %751  ;;  %v3330_v63 = vpop.permute.xlu0 %746 }
  0x99   : > { %1162 = vperm.xlu1 %2905, %v3264_v51   ;;  %1170 = vperm.xlu0 %2904, %v3279_v55  }
  0x9b   : > { %v3334_v2 = vpop.permute.xlu1 %761  ;;  %v3336_v3 = vpop.permute.xlu0 %756 }
  0x9d   : > { %2906 = vset.pattern.permute.xlu1 %v2961_v4  ;;  %2909 = vset.pattern.permute.xlu0 %v2961_v4 }
  0x9e   : > { %1309 = vperm.xlu1 %2906, %v3048_v6   ;;  %1305 = vperm.xlu0 %2909, %v3031_v1  }
  0x9f   : > { %v3342_v9 = vpop.permute.xlu1 %771  ;;  %v3344_v10 = vpop.permute.xlu0 %766 }
  0xa2   : > { %1313 = vperm.xlu1 %2906, %v3026_v0   ;;  %1317 = vperm.xlu0 %2909, %v3043_v5  }
  0xa3   : > { %v3348_v11 = vpop.permute.xlu1 %781  ;;  %v3350_v16 = vpop.permute.xlu0 %776 }
  0xa6   : > { %1321 = vperm.xlu1 %2906, %v3061_v8   ;;  %1325 = vperm.xlu0 %2909, %v3056_v7  }
  0xa7   : > { %v3354_v17 = vpop.permute.xlu1 %791  ;;  %v3356_v6 = vpop.permute.xlu0 %786 }
  0xaa   : > { %1329 = vperm.xlu1 %2906, %v3083_v13   ;;  %1333 = vperm.xlu0 %2909, %v3077_v12  }
  0xab   : > { %v3360_v1 = vpop.permute.xlu1 %801  ;;  %v3362_v0 = vpop.permute.xlu0 %796 }
  0xae   : > { %1337 = vperm.xlu1 %2906, %v3096_v15   ;;  %1341 = vperm.xlu0 %2909, %v3091_v14  }
  0xaf   : > { %v3366_v5 = vpop.permute.xlu1 %811  ;;  %v3368_v8 = vpop.permute.xlu0 %806 }
  0xb2   : > { %1345 = vperm.xlu1 %2906, %v3111_v19   ;;  %1349 = vperm.xlu0 %2909, %v3105_v18  }
  0xb3   : > { %v3372_v7 = vpop.permute.xlu1 %821  ;;  %v3374_v13 = vpop.permute.xlu0 %816 }
  0xb6   : > { %1353 = vperm.xlu1 %2906, %v3124_v21   ;;  %1357 = vperm.xlu0 %2909, %v3117_v20  }
  0xb7   : > { %v3378_v12 = vpop.permute.xlu1 %831  ;;  %v3380_v15 = vpop.permute.xlu0 %826 }
  0xba   : > { %1361 = vperm.xlu1 %2906, %v3139_v25   ;;  %1365 = vperm.xlu0 %2909, %v3134_v24  }
  0xbb   : > { %v3384_v14 = vpop.permute.xlu1 %841  ;;  %v3386_v19 = vpop.permute.xlu0 %836 }
  0xbe   : > { %1369 = vperm.xlu1 %2906, %v3150_v27   ;;  %1373 = vperm.xlu0 %2909, %v3145_v26  }
  0xbf   : > { %v3390_v18 = vpop.permute.xlu1 %851  ;;  %v3392_v21 = vpop.permute.xlu0 %846 }
  0xc0   : > { %4794 = vst [vmem:[#allocation2_spill] sm:$0xff] %v3390_v18 }
  0xc2   : > { %1377 = vperm.xlu1 %2906, %v3167_v31   ;;  %1381 = vperm.xlu0 %2909, %v3162_v30  }
  0xc3   : > { %v3396_v20 = vpop.permute.xlu1 %861  ;;  %v3398_v22 = vpop.permute.xlu0 %856 }
  0xc6   : > { %1385 = vperm.xlu1 %2906, %v3180_v33   ;;  %1389 = vperm.xlu0 %2909, %v3175_v32  }
  0xc7   : > { %v3402_v23 = vpop.permute.xlu1 %871  ;;  %v3404_v24 = vpop.permute.xlu0 %866 }
  0xc8   : > { %4795 = vst [vmem:[#allocation3_spill] sm:$0xff] %v3402_v23  ;;  %4796 = vst [vmem:[#allocation4_spill] sm:$0xff] %v3404_v24 }
  0xca   : > { %1393 = vperm.xlu1 %2906, %v3195_v37   ;;  %1397 = vperm.xlu0 %2909, %v3190_v36  }
  0xcb   : > { %v3408_v25 = vpop.permute.xlu1 %881  ;;  %v3410_v26 = vpop.permute.xlu0 %876 }
  0xcc   : > { %4797 = vst [vmem:[#allocation5_spill] sm:$0xff] %v3408_v25  ;;  %4798 = vst [vmem:[#allocation6_spill] sm:$0xff] %v3410_v26 }
  0xce   : > { %1401 = vperm.xlu1 %2906, %v3208_v39   ;;  %1405 = vperm.xlu0 %2909, %v3203_v38  }
  0xcf   : > { %v3414_v27 = vpop.permute.xlu1 %891  ;;  %v3416_v28 = vpop.permute.xlu0 %886 }
  0xd0   : > { %4799 = vst [vmem:[#allocation7_spill] sm:$0xff] %v3414_v27  ;;  %4800 = vst [vmem:[#allocation8_spill] sm:$0xff] %v3416_v28 }
  0xd2   : > { %1409 = vperm.xlu1 %2906, %v3223_v43   ;;  %1413 = vperm.xlu0 %2909, %v3218_v42  }
  0xd3   : > { %v3420_v29 = vpop.permute.xlu1 %901  ;;  %v3422_v30 = vpop.permute.xlu0 %896 }
  0xd4   : > { %4801 = vst [vmem:[#allocation9_spill] sm:$0xff] %v3420_v29  ;;  %4802 = vst [vmem:[#allocation10_spill] sm:$0xff] %v3422_v30 }
  0xd6   : > { %1417 = vperm.xlu1 %2906, %v3236_v45   ;;  %1421 = vperm.xlu0 %2909, %v3231_v44   ;;  %v994_v44 = vlaneseq }
  0xd8   : > { %v3426_v31 = vpop.permute.xlu1 %1038  ;;  %v3428_v32 = vpop.permute.xlu0 %1034 }
  0xd9   : > { %4803 = vst [vmem:[#allocation11_spill] sm:$0xff] %v3426_v31  ;;  %4804 = vst [vmem:[#allocation12_spill] sm:$0xff] %v3428_v32 }
  0xda   : > { %1425 = vperm.xlu1 %2906, %v3251_v49   ;;  %1429 = vperm.xlu0 %2909, %v3246_v48  }
  0xdc   : > { %v3432_v33 = vpop.permute.xlu1 %1042  ;;  %v3434_v34 = vpop.permute.xlu0 %1046 }
  0xde   : > { %2907 = vset.pattern.permute.xlu1 %v2960_v57  ;;  %1433 = vperm.xlu0 %2909, %v3264_v51  }
  0xdf   : > { %1166 = vperm.xlu1 %2907, %v3259_v50  }
  0xe0   : > { %v3439_v35 = vpop.permute.xlu1 %1050  ;;  %v3441_v36 = vpop.permute.xlu0 %1054 }
  0xe2   : > { %1445 = vperm.xlu0 %2909, %v3274_v54  }
  0xe3   : > { %2908 = vset.pattern.permute.xlu1 %v2961_v4 }
  0xe4   : > { %1437 = vperm.xlu1 %2908, %v3259_v50   ;;  %v3446_v37 = vpop.permute.xlu1 %1058  ;;  %v3448_v38 = vpop.permute.xlu0 %1062 }
  0xe8   : > { %2910 = vset.pattern.permute.xlu1 %v2960_v57  ;;  %v3451_v39 = vpop.permute.xlu1 %1066  ;;  %v3453_v40 = vpop.permute.xlu0 %1070 }
  0xe9   : > { %1174 = vperm.xlu1 %2910, %v3274_v54   ;;  %v2788_v45 = vpop.f32.mrb[0].mxu0  ;;  %v3472_v54 = vshrl.u32 %v994_v44, 7 }
  0xea   : > { %v517_v46 = vadd.f32 %v2788_v45, %v3459_v41  ;;  %v508_v47 = vpop.f32.mrb[1].mxu0 }
  0xeb   : > { %v509_v48 = vadd.f32 %v3459_v41, %v508_v47  ;;  %v2789_v49 = vpop.f32.mrb[2].mxu0  ;;  %vm1267_vm2 = vcmp.lt.s32.totalorder %v3472_v54, 7  ;;  %vm996_vm3 = vcmp.lt.s32.totalorder %v3472_v54, 1 }
  0xec   : > { %v3461_v42 = vpop.permute.xlu1 %1074  ;;  %v3463_v43 = vpop.permute.xlu0 %1078  ;;  %v653_v50 = vmax.f32 %v517_v46, 0.0  ;;  %v520_v51 = vadd.f32 %v2789_v49, %v3459_v41 }
  0xed   : > { %2911 = vset.pattern.permute.xlu1 %v2961_v4  ;;  %v511_v52 = vpop.f32.mrb[3].mxu0  ;;  %v651_v56 = vmax.f32 %v509_v48, 0.0 }
  0xee   : > { %1441 = vperm.xlu1 %2911, %v3279_v55   ;;  %v512_v57 = vadd.f32 %v3459_v41, %v511_v52  ;;  %v906_v45 = vmul.f32 %v3316_v58, %v653_v50  ;;  %v654_v32 = vmax.f32 %v520_v51, 0.0 }
  0xef   : > { %v3479_v55 = vmul.f32 %v3318_v59, %v651_v56 }
  0xf0   : > { %v3470_v53 = vpop.permute.xlu1 %1082  ;;  %v3475_v4 = vpop.permute.xlu0 %1086  ;;  %v652_v47 = vmax.f32 %v512_v57, 0.0  ;;  %v960_v46 = vrot.slane %v906_v45, 7  ;;  %v3482_v49 = vmul.f32 %v3322_v60, %v654_v32  ;;  %v1233_v51 = vrot.slane %v906_v45, 1 }
  0xf1   : > { %v2792_v44 = vpop.f32.mrb[4].mxu0 }
  0xf2   : > { %v3489_v48 = vmul.f32 %v3324_v61, %v652_v47  ;;  %v533_v59 = vadd.f32 %v2792_v44, %v3459_v41  ;;  %v524_v50 = vpop.f32.mrb[5].mxu0  ;;  %v4775_v60 = vrot.slane %v3482_v49, 7  ;;  %v941_v57 = vpack.c.bf16 %v3482_v49, %v906_v45 }
  0xf3   : > { %v525_v32 = vadd.f32 %v3459_v41, %v524_v50  ;;  %v2793_v56 = vpop.f32.mrb[6].mxu0  ;;  %v1234_v27 = vrot.slane %v3482_v49, 1 }
  0xf4   : > { %v3484_v31 = vpop.permute.xlu1 %1090  ;;  %4805 = vst [vmem:[#allocation13_spill] sm:$0xff] %v3489_v48  ;;  %v3491_v58 = vpop.permute.xlu0 %1094  ;;  %v657_v47 = vmax.f32 %v533_v59, 0.0  ;;  %v536_v29 = vadd.f32 %v2793_v56, %v3459_v41  ;;  %v940_v44 = vpack.c.bf16 %v3489_v48, %v3479_v55  ;;  %1647 = vrot.lane.b32.xlu0 %v941_v57, %s2962_s27  ;;  %1520 = vrot.lane.b32.xlu1 %v941_v57, %s2963_s28  ;;  %v1232_v52 = vrot.slane %v3489_v48, 1 }
  0xf5   : > { %v527_v28 = vpop.f32.mrb[7].mxu0  ;;  %v655_v30 = vmax.f32 %v525_v32, 0.0  ;;  %v3511_v59 = vsel %vm1267_vm2, %v1233_v51, %v1234_v27  ;;  %v1029_v57 = vsel %vm996_vm3, %v960_v46, %v4775_v60 }
  0xf6   : > { %v528_v45 = vadd.f32 %v3459_v41, %v527_v28  ;;  %v3514_v56 = vmul.f32 %v3336_v3, %v657_v47  ;;  %v658_v32 = vmax.f32 %v536_v29, 0.0  ;;  %v4808_v28 = vrot.slane %v3489_v48, 7 }
  0xf7   : > { %v908_v23 = vmul.f32 %v3330_v63, %v655_v30  ;;  %v3529_v3 = vsel %vm1267_vm2, %v1232_v52, %v1233_v51  ;;  %v4809_v29 = vrot.slane %v3479_v55, 1 }
  0xf8   : > { %v3506_v50 = vpop.permute.xlu1 %1098  ;;  %v3516_v61 = vpop.permute.xlu0 %1102  ;;  %v656_v25 = vmax.f32 %v528_v45, 0.0  ;;  %1518 = vrot.lane.b32.xlu1 %v940_v44, %s2963_s28 }
  0xf9   : > { %4806 = vst [vmem:[#allocation14_spill] sm:$0xff] %v3506_v50  ;;  %4807 = vst [vmem:[#allocation15_spill] sm:$0xff] %v3516_v61  ;;  %v1030_v50 = vsel %vm996_vm3, %v4808_v28, %v960_v46  ;;  %v3535_v47 = vsel %vm1267_vm2, %v4809_v29, %v1232_v52  ;;  %v3539_v61 = vmul.f32 %v3334_v2, %v658_v32  ;;  %v1237_v46 = vrot.slane %v3514_v56, 1  ;;  %v2796_v28 = vpop.f32.mrb[8].mxu0 }
  0xfa   : > { %v1179_v63 = vmul.f32 %v3432_v33, %v1030_v50  ;;  %v962_v30 = vrot.slane %v908_v23, 7  ;;  %v909_v45 = vmul.f32 %v3328_v62, %v656_v25  ;;  %v1235_v24 = vrot.slane %v908_v23, 1  ;;  %v540_v32 = vpop.f32.mrb[9].mxu0 }
  0xfb   : > { %v1180_v52 = vmul.f32 %v3434_v34, %v1029_v57  ;;  %v549_v2 = vadd.f32 %v2796_v28, %v3459_v41  ;;  %v1238_v33 = vrot.slane %v3539_v61, 1  ;;  %v3555_v62 = vpack.c.bf16 %v3539_v61, %v3514_v56  ;;  %v2797_v50 = vpop.f32.mrb[10].mxu0 }
  0xfc   : > { %v3545_v51 = vpop.permute.xlu1 %1106  ;;  %v3549_v60 = vpop.permute.xlu0 %1110  ;;  %v963_v25 = vrot.slane %v909_v45, 7  ;;  %v541_v44 = vadd.f32 %v3459_v41, %v540_v32  ;;  %v3562_v34 = vsel %vm1267_vm2, %v1234_v27, %v1235_v24  ;;  %v552_v28 = vadd.f32 %v2797_v50, %v3459_v41 }
  0xfd   : > { %4810 = vst [vmem:[#allocation16_spill] sm:$0xff] %v3545_v51  ;;  %4811 = vst [vmem:[#allocation17_spill] sm:$0xff] %v3549_v60  ;;  %v3558_v51 = vpack.c.bf16 %v909_v45, %v908_v23  ;;  %v661_v57 = vmax.f32 %v549_v2, 0.0  ;;  %v543_v29 = vpop.f32.mrb[11].mxu0  ;;  %v1236_v60 = vrot.slane %v909_v45, 1  ;;  %v3565_v26 = vpack.c.bf16 %v1180_v52, %v1179_v63 }
  0xfe   : > { %4812 = vst [vmem:[#allocation18_spill] sm:$0xff] %v3555_v62  ;;  %v659_v18 = vmax.f32 %v541_v44, 0.0  ;;  %v544_v62 = vadd.f32 %v3459_v41, %v543_v29  ;;  %v3574_v23 = vsel %vm1267_vm2, %v1237_v46, %v1238_v33  ;;  %v1027_v27 = vsel %vm996_vm3, %v962_v30, %v963_v25 }
  0xff   : > { %4813 = vst [vmem:[#allocation19_spill] sm:$0xff] %v3558_v51  ;;  %4814 = vst [vmem:[#allocation20_spill] sm:$0xff] %v3565_v26  ;;  %1649 = vrot.lane.b32.xlu1 %v3558_v51, %s2962_s27  ;;  %v3579_v2 = vmul.f32 %v3350_v16, %v661_v57  ;;  %v662_v63 = vmax.f32 %v552_v28, 0.0  ;;  %v3585_v52 = vsel %vm1267_vm2, %v1235_v24, %v1236_v60  ;;  %v4817_v50 = vrot.slane %v3482_v49, 7 }
 0x100   : > { %v3568_v48 = vpop.permute.xlu1 %1114  ;;  %v3581_v45 = vpop.permute.xlu0 %1118  ;;  %v3589_v29 = vsel %vm1267_vm2, %v1236_v60, %v1237_v46  ;;  %v3592_v32 = vmul.f32 %v3344_v10, %v659_v18  ;;  %v660_v44 = vmax.f32 %v544_v62, 0.0  ;;  %v1182_v57 = vmul.f32 %v3441_v36, %v1027_v27 }
 0x101   : > { %4815 = vst [vmem:[#allocation21_spill] sm:$0xff] %v3568_v48  ;;  %4816 = vst [vmem:[#allocation22_spill] sm:$0xff] %v3581_v45  ;;  %v1028_v16 = vsel %vm996_vm3, %v4817_v50, %v962_v30  ;;  %v3600_v28 = vmul.f32 %v3348_v11, %v662_v63  ;;  %v2800_v10 = vpop.f32.mrb[12].mxu0  ;;  %v1241_v49 = vrot.slane %v3579_v2, 1  ;;  %v4819_v46 = vrot.slane %v3539_v61, 7 }
 0x102   : > { %v1181_v24 = vmul.f32 %v3439_v35, %v1028_v16  ;;  %v3604_v45 = vmul.f32 %v3342_v9, %v660_v44  ;;  %v1239_v18 = vrot.slane %v3592_v32, 1  ;;  %v4820_v30 = vrot.slane %v3514_v56, 7  ;;  %v556_v62 = vpop.f32.mrb[13].mxu0 }
 0x103   : > { %v966_v36 = vrot.slane %v3592_v32, 7  ;;  %v565_v9 = vadd.f32 %v2800_v10, %v3459_v41  ;;  %v1242_v63 = vrot.slane %v3600_v28, 1  ;;  %v557_v50 = vadd.f32 %v3459_v41, %v556_v62  ;;  %v2801_v16 = vpop.f32.mrb[14].mxu0 }
 0x104   : > { %v3606_v60 = vpop.permute.xlu1 %1122  ;;  %v1025_v11 = vsel %vm996_vm3, %v4820_v30, %v4819_v46  ;;  %v3617_v35 = vpop.permute.xlu0 %1126  ;;  %v3620_v27 = vpack.c.bf16 %v1182_v57, %v1181_v24  ;;  %v967_v44 = vrot.slane %v3604_v45, 7  ;;  %v1240_v46 = vrot.slane %v3604_v45, 1 }
 0x105   : > { %4818 = vst [vmem:[#allocation23_spill] sm:$0xff] %v3606_v60  ;;  %4821 = vst [vmem:[#allocation24_spill] sm:$0xff] %v3617_v35  ;;  %v3627_v60 = vsel %vm1267_vm2, %v1238_v33, %v1239_v18  ;;  %v665_v30 = vmax.f32 %v565_v9, 0.0  ;;  %v568_v35 = vadd.f32 %v2801_v16, %v3459_v41  ;;  %v559_v10 = vpop.f32.mrb[15].mxu0  ;;  %v3633_v57 = vsel %vm1267_vm2, %v1241_v49, %v1242_v63 }
 0x106   : > { %4822 = vst [vmem:[#allocation25_spill] sm:$0xff] %v3620_v27  ;;  %4823 = vst [vmem:[#allocation26_spill] sm:$0xff] %v3633_v57  ;;  %v4824_v24 = vrot.slane %v3514_v56, 7  ;;  %v663_v48 = vmax.f32 %v557_v50, 0.0  ;;  %v560_v51 = vadd.f32 %v3459_v41, %v559_v10  ;;  %v3644_v9 = vsel %vm1267_vm2, %v1239_v18, %v1240_v46 }
 0x107   : > { %v3648_v16 = vsel %vm1267_vm2, %v1240_v46, %v1241_v49  ;;  %v3651_v57 = vmul.f32 %v3362_v0, %v665_v30  ;;  %v666_v56 = vmax.f32 %v568_v35, 0.0  ;;  %v1184_v50 = vmul.f32 %v3448_v38, %v1025_v11 }
 0x108   : > { %v1026_v62 = vsel %vm996_vm3, %v963_v25, %v4824_v24  ;;  %v3640_v33 = vpop.permute.xlu1 %1130  ;;  %v3653_v27 = vpop.permute.xlu0 %1134  ;;  %v3658_v10 = vmul.f32 %v3356_v6, %v663_v48  ;;  %v664_v24 = vmax.f32 %v560_v51, 0.0  ;;  %v1023_v18 = vsel %vm996_vm3, %v966_v36, %v967_v44 }
 0x109   : > { %4825 = vst [vmem:[#allocation27_spill] sm:$0xff] %v3640_v33  ;;  %v1183_v25 = vmul.f32 %v3446_v37, %v1026_v62  ;;  %v4826_v49 = vrot.slane %v3539_v61, 7  ;;  %v3667_v35 = vmul.f32 %v3360_v1, %v666_v56  ;;  %v2804_v48 = vpop.f32.mrb[16].mxu0  ;;  %v1245_v61 = vrot.slane %v3651_v57, 1 }
 0x10a   : > { %v3673_v38 = vmul.f32 %v3354_v17, %v664_v24  ;;  %v1243_v51 = vrot.slane %v3658_v10, 1  ;;  %v572_v1 = vpop.f32.mrb[17].mxu0  ;;  %v1186_v56 = vmul.f32 %v3453_v40, %v1023_v18  ;;  %v968_v17 = vrot.slane %v3579_v2, 7 }
 0x10b   : > { %v1024_v0 = vsel %vm996_vm3, %v4826_v49, %v966_v36  ;;  %v3669_v46 = vpack.c.bf16 %v1184_v50, %v1183_v25  ;;  %v581_v36 = vadd.f32 %v2804_v48, %v3459_v41  ;;  %v1246_v30 = vrot.slane %v3667_v35, 1  ;;  %v2805_v50 = vpop.f32.mrb[18].mxu0 }
 0x10c   : > { %v3675_v6 = vpop.permute.xlu1 %1138  ;;  %v3679_v11 = vpop.permute.xlu0 %1142  ;;  %v1185_v62 = vmul.f32 %v3451_v39, %v1024_v0  ;;  %v573_v25 = vadd.f32 %v3459_v41, %v572_v1  ;;  %v3689_v24 = vsel %vm1267_vm2, %v1242_v63, %v1243_v51  ;;  %v1244_v49 = vrot.slane %v3673_v38, 1 }
 0x10d   : > { %4827 = vst [vmem:[#allocation28_spill] sm:$0xff] %v3675_v6  ;;  %4828 = vst [vmem:[#allocation29_spill] sm:$0xff] %v3679_v11  ;;  %v669_v37 = vmax.f32 %v581_v36, 0.0  ;;  %v584_v48 = vadd.f32 %v2805_v50, %v3459_v41  ;;  %v575_v11 = vpop.f32.mrb[19].mxu0  ;;  %v3695_v39 = vsel %vm1267_vm2, %v1245_v61, %v1246_v30 }
 0x10e   : > { %v3697_v40 = vpack.c.bf16 %v1186_v56, %v1185_v62  ;;  %v667_v18 = vmax.f32 %v573_v25, 0.0  ;;  %v576_v0 = vadd.f32 %v3459_v41, %v575_v11  ;;  %v3704_v63 = vsel %vm1267_vm2, %v1243_v51, %v1244_v49 }
 0x10f   : > { %v3708_v36 = vsel %vm1267_vm2, %v1244_v49, %v1245_v61  ;;  %v3711_v50 = vmul.f32 %v3374_v13, %v669_v37  ;;  %v670_v6 = vmax.f32 %v584_v48, 0.0  ;;  %v3717_v62 = vpack.c.bf16 %v3604_v45, %v3592_v32 }
 0x110   : > { %v3700_v1 = vpop.permute.xlu1 %1146  ;;  %v3713_v33 = vpop.permute.xlu0 %1150  ;;  %v4831_v11 = vrot.slane %v3600_v28, 7  ;;  %v3724_v56 = vmul.f32 %v3368_v8, %v667_v18  ;;  %v668_v61 = vmax.f32 %v576_v0, 0.0  ;;  %v1022_v13 = vsel %vm996_vm3, %v967_v44, %v968_v17 }
 0x111   : > { %4829 = vst [vmem:[#allocation30_spill] sm:$0xff] %v3700_v1  ;;  %4830 = vst [vmem:[#allocation31_spill] sm:$0xff] %v3717_v62  ;;  %v972_v25 = vrot.slane %v3651_v57, 7  ;;  %v971_v49 = vrot.slane %v3673_v38, 7  ;;  %v3732_v45 = vmul.f32 %v3372_v7, %v670_v6  ;;  %v1187_v32 = vmul.f32 %v3461_v42, %v1022_v13  ;;  %v2808_v0 = vpop.f32.mrb[20].mxu0 }
 0x112   : > { %v1021_v51 = vsel %vm996_vm3, %v968_v17, %v4831_v11  ;;  %v970_v48 = vrot.slane %v3658_v10, 7  ;;  %v3737_v8 = vmul.f32 %v3366_v5, %v668_v61  ;;  %v1247_v44 = vrot.slane %v3724_v56, 1  ;;  %v588_v6 = vpop.f32.mrb[21].mxu0 }
 0x113   : > { %v1188_v37 = vmul.f32 %v3463_v43, %v1021_v51  ;;  %v3744_v43 = vpack.c.bf16 %v3600_v28, %v3579_v2  ;;  %v597_v7 = vadd.f32 %v2808_v0, %v3459_v41  ;;  %v1249_v42 = vrot.slane %v3711_v50, 1  ;;  %v2809_v13 = vpop.f32.mrb[22].mxu0 }
 0x114   : > { %v3739_v18 = vpop.permute.xlu1 %1154  ;;  %v3746_v17 = vpop.permute.xlu0 %1158  ;;  %v1250_v11 = vrot.slane %v3732_v45, 1  ;;  %v589_v61 = vadd.f32 %v3459_v41, %v588_v6  ;;  %v3757_v2 = vsel %vm1267_vm2, %v1246_v30, %v1247_v44  ;;  %v600_v0 = vadd.f32 %v2809_v13, %v3459_v41 }
 0x115   : > { %4832 = vst [vmem:[#allocation32_spill] sm:$0xff] %v3739_v18  ;;  %4833 = vst [vmem:[#allocation33_spill] sm:$0xff] %v3744_v43  ;;  %v3751_v5 = vpack.c.bf16 %v1188_v37, %v1187_v32  ;;  %v1248_v43 = vrot.slane %v3737_v8, 1  ;;  %v591_v18 = vpop.f32.mrb[23].mxu0  ;;  %v1019_v37 = vsel %vm996_vm3, %v970_v48, %v971_v49 }
 0x116   : > { %4834 = vst [vmem:[#allocation34_spill] sm:$0xff] %v3746_v17  ;;  %v673_v17 = vmax.f32 %v597_v7, 0.0  ;;  %v3763_v1 = vsel %vm1267_vm2, %v1249_v42, %v1250_v11  ;;  %v671_v32 = vmax.f32 %v589_v61, 0.0  ;;  %v592_v6 = vadd.f32 %v3459_v41, %v591_v18 }
 0x117   : > { %4835 = vst [vmem:[#allocation35_spill] sm:$0xff] %v3751_v5  ;;  %v3772_v30 = vsel %vm1267_vm2, %v1247_v44, %v1248_v43  ;;  %v3776_v7 = vsel %vm1267_vm2, %v1248_v43, %v1249_v42  ;;  %v674_v5 = vmax.f32 %v600_v0, 0.0  ;;  %v4838_v61 = vrot.slane %v3600_v28, 7  ;;  %v2930_v44 = vld [vmem:[%s4772_s4] sm:$0xff]  }
 0x118   : > { %v3768_v51 = vpop.permute.xlu1 %1162  ;;  %v3779_v13 = vmul.f32 %v3386_v19, %v673_v17  ;;  %v3781_v62 = vpop.permute.xlu0 %1170  ;;  %v3792_v43 = vmul.f32 %v3380_v15, %v671_v32  ;;  %v672_v42 = vmax.f32 %v592_v6, 0.0  ;;  %v3797_v17 = vpack.c.bf16 %v3673_v38, %v3658_v10  ;;  %2822 = vmatprep.subr.bf16.mxu1 %v2930_v44 }
 0x119   : > { %4836 = vst [vmem:[#allocation36_spill] sm:$0xff] %v3768_v51  ;;  %4837 = vst [vmem:[#allocation37_spill] sm:$0xff] %v3781_v62  ;;  %v1020_v18 = vsel %vm996_vm3, %v4838_v61, %v970_v48  ;;  %v1190_v51 = vmul.f32 %v3475_v4, %v1019_v37  ;;  %v3800_v28 = vmul.f32 %v3384_v14, %v674_v5  ;;  %v4840_v48 = vrot.slane %v3667_v35, 7  ;;  %v2812_v15 = vpop.f32.mrb[24].mxu0 }
 0x11a   : > { %v1189_v19 = vmul.f32 %v3470_v53, %v1020_v18  ;;  %4839 = vst [vmem:[#allocation38_spill] sm:$0xff] %v3797_v17  ;;  %v3807_v0 = vmul.f32 %v3378_v12, %v672_v42  ;;  %v1251_v37 = vrot.slane %v3792_v43, 1  ;;  %2823 = vmatpush3.bf16.msra.mxu1 %v2930_v44  ;;  %v613_v10 = vadd.f32 %v2812_v15, %v3459_v41  ;;  %v2931_v12 = vld [vmem:[%s4772_s4 + $0x8] sm:$0xff]   ;;  %v604_v44 = vpop.f32.mrb[25].mxu0 }
 0x11b   : > { %v1017_v4 = vsel %vm996_vm3, %v972_v25, %v4840_v48  ;;  %v1253_v5 = vrot.slane %v3779_v13, 1  ;;  %v1254_v32 = vrot.slane %v3800_v28, 1  ;;  %v1018_v6 = vsel %vm996_vm3, %v971_v49, %v972_v25  ;;  %v2813_v15 = vpop.f32.mrb[26].mxu0  ;;  %2824 = vmatprep.subr.bf16.mxu1 %v2931_v12 }
 0x11c   : > { %v3810_v53 = vpack.c.bf16 %v1190_v51, %v1189_v19  ;;  %v3825_v42 = vsel %vm1267_vm2, %v1250_v11, %v1251_v37  ;;  %v677_v19 = vmax.f32 %v613_v10, 0.0  ;;  %v605_v48 = vadd.f32 %v3459_v41, %v604_v44 }
 0x11d   : > { %v1310_v38 = vpop.permute.xlu1 %1309  ;;  %v1306_v14 = vpop.permute.xlu0 %1305  ;;  %v1252_v25 = vrot.slane %v3807_v0, 1  ;;  %v3831_v49 = vsel %vm1267_vm2, %v1253_v5, %v1254_v32  ;;  %v1192_v11 = vmul.f32 %v3491_v58, %v1017_v4 }
 0x11e   : > { %4841 = vst [vmem:[#allocation39_spill] sm:$0xff] %v3810_v53  ;;  %v1449_v51 = vmul.f32 %v1310_v38, %v3529_v3  ;;  %v1448_v18 = vmul.f32 %v1306_v14, %v3535_v47  ;;  %v616_v3 = vadd.f32 %v2813_v15, %v3459_v41  ;;  %v607_v47 = vpop.f32.mrb[27].mxu0  ;;  %v1191_v38 = vmul.f32 %v3484_v31, %v1018_v6 }
 0x11f   : > { %2825 = vmatpush3.bf16.msra.mxu1 %v2931_v12  ;;  %v3837_v10 = vmul.f32 %v3398_v22, %v677_v19  ;;  %v675_v14 = vmax.f32 %v605_v48, 0.0  ;;  %v608_v44 = vadd.f32 %v3459_v41, %v607_v47  ;;  %v3842_v53 = vsel %vm1267_vm2, %v1251_v37, %v1252_v25 }
 0x120   : > { %v1484_v61 = vpack.c.bf16 %v1449_v51, %v1448_v18  ;;  %v2932_v51 = vld [vmem:[%s4772_s4 + $0x10] sm:$0xff]   ;;  %v678_v31 = vmax.f32 %v616_v3, 0.0  ;;  %v3852_v22 = vsel %vm1267_vm2, %v1252_v25, %v1253_v5  ;;  %v2933_v3 = vld [vmem:[%s4772_s4 + $0x18] sm:$0xff]  }
 0x121   : > { %v1314_v17 = vpop.permute.xlu1 %1313  ;;  %v1318_v62 = vpop.permute.xlu0 %1317  ;;  %v3855_v6 = vmul.f32 %v3392_v21, %v675_v14  ;;  %v676_v37 = vmax.f32 %v608_v44, 0.0  ;;  %2826 = vmatprep.subr.bf16.mxu1 %v2932_v51  ;;  %v4846_v21 = vld [vmem:[#allocation2_spill] sm:$0xff]  ;;  %v1257_v14 = vrot.slane %v3837_v10, 1 }
 0x122   : > { %v1450_v58 = vmul.f32 %v1314_v17, %v3511_v59  ;;  %v1451_v4 = vmul.f32 %v1318_v62, %v3562_v34  ;;  %1566 = vrot.lane.b32.xlu0 %v1484_v61, %s2964_s11  ;;  %v3858_v12 = vmul.f32 %v3396_v20, %v678_v31  ;;  %v2816_v19 = vpop.f32.mrb[28].mxu0  ;;  %v3860_v59 = vpack.c.bf16 %v1192_v11, %v1191_v38  ;;  %v4843_v34 = vld [vmem:[#allocation13_spill] sm:$0xff] }
 0x123   : > { %v4844_v62 = vrot.slane %v4843_v34, 7  ;;  %v4845_v17 = vrot.slane %v3479_v55, 7  ;;  %2827 = vmatpush3.bf16.msra.mxu1 %v2932_v51  ;;  %v3871_v61 = vmul.f32 %v4846_v21, %v676_v37  ;;  %v629_v48 = vadd.f32 %v2816_v19, %v3459_v41  ;;  %v620_v11 = vpop.f32.mrb[29].mxu0  ;;  %v4849_v21 = vld [vmem:[#allocation6_spill] sm:$0xff] }
 0x124   : > { %v1485_v18 = vpack.c.bf16 %v1451_v4, %v1450_v58  ;;  %4842 = vst [vmem:[#allocation40_spill] sm:$0xff] %v3860_v59  ;;  %v1255_v25 = vrot.slane %v3855_v6, 1  ;;  %v1258_v44 = vrot.slane %v3858_v12, 1  ;;  %v621_v58 = vadd.f32 %v3459_v41, %v620_v11  ;;  %v2817_v4 = vpop.f32.mrb[30].mxu0  ;;  %2828 = vmatprep.subr.bf16.mxu1 %v2933_v3 }
 0x125   : > { %v3868_v5 = vsel %vm996_vm3, %v4845_v17, %v4844_v62  ;;  %v1322_v20 = vpop.permute.xlu1 %1321  ;;  %v1326_v15 = vpop.permute.xlu0 %1325  ;;  %v681_v31 = vmax.f32 %v629_v48, 0.0  ;;  %v632_v37 = vadd.f32 %v2817_v4, %v3459_v41  ;;  %v1256_v34 = vrot.slane %v3871_v61, 1 }
 0x126   : > { %v1452_v47 = vmul.f32 %v1322_v20, %v3585_v52  ;;  %v1453_v38 = vmul.f32 %v1326_v15, %v3589_v29  ;;  %1614 = vrot.lane.b32.xlu0 %v3565_v26, %s2965_s14  ;;  %1568 = vrot.lane.b32.xlu1 %v1485_v18, %s2964_s11  ;;  %v3889_v52 = vsel %vm1267_vm2, %v1254_v32, %v1255_v25  ;;  %v623_v19 = vpop.f32.mrb[31].mxu0  ;;  %v679_v32 = vmax.f32 %v621_v58, 0.0 }
 0x127   : > { %4847 = vst [vmem:[#allocation13_spill] sm:$0xff] %v3889_v52  ;;  %v3897_v62 = vsel %vm1267_vm2, %v1257_v14, %v1258_v44  ;;  %2829 = vmatpush3.bf16.msra.mxu1 %v2933_v3  ;;  %v3901_v48 = vmul.f32 %v4849_v21, %v681_v31  ;;  %v624_v20 = vadd.f32 %v3459_v41, %v623_v19  ;;  %v4850_v3 = vld [vmem:[#allocation25_spill] sm:$0xff]  ;;  %v974_v58 = vrot.slane %v3724_v56, 7  ;;  %v4852_v19 = vld [vmem:[#allocation4_spill] sm:$0xff] }
 0x128   : > { %v3891_v29 = vpack.c.bf16 %v1453_v38, %v1452_v47  ;;  %4848 = vst [vmem:[#allocation2_spill] sm:$0xff] %v3897_v62  ;;  %v682_v38 = vmax.f32 %v632_v37, 0.0  ;;  %v3911_v31 = vsel %vm1267_vm2, %v1255_v25, %v1256_v34  ;;  %v3915_v21 = vmul.f32 %v4852_v19, %v679_v32  ;;  %v4856_v32 = vld [vmem:[#allocation3_spill] sm:$0xff] }
 0x129   : > { %v1330_v15 = vpop.permute.xlu1 %1329  ;;  %v1334_v47 = vpop.permute.xlu0 %1333  ;;  %4851 = vst [vmem:[#allocation6_spill] sm:$0xff] %v3911_v31  ;;  %v680_v37 = vmax.f32 %v624_v20, 0.0  ;;  %v3929_v25 = vpack.c.bf16 %v3667_v35, %v3651_v57  ;;  %v4860_v62 = vrot.slane %v3667_v35, 7 }
 0x12a   : > { %v1454_v11 = vmul.f32 %v1330_v15, %v3574_v23  ;;  %v1455_v4 = vmul.f32 %v1334_v47, %v3627_v60  ;;  %1680 = vrot.lane.b32.xlu0 %v1485_v18, %s2966_s15  ;;  %1616 = vrot.lane.b32.xlu1 %v4850_v3, %s2965_s14  ;;  %v3919_v23 = vsel %vm1267_vm2, %v1256_v34, %v1257_v14  ;;  %v4854_v18 = vld [vmem:[#allocation5_spill] sm:$0xff]  ;;  %v2820_v20 = vpop.f32.mrb[32].mxu0  ;;  %v1259_v14 = vrot.slane %v3915_v21, 1 }
 0x12b   : > { %4853 = vst [vmem:[#allocation4_spill] sm:$0xff] %v3919_v23  ;;  %v3923_v15 = vmul.f32 %v4854_v18, %v682_v38  ;;  %4855 = vst [vmem:[#allocation5_spill] sm:$0xff] %v3929_v25  ;;  %v3933_v19 = vmul.f32 %v4856_v32, %v680_v37  ;;  %v4857_v34 = vrot.slane %v3737_v8, 7  ;;  %v636_v18 = vpop.f32.mrb[33].mxu0  ;;  %v1261_v37 = vrot.slane %v3901_v48, 1  ;;  %v4862_v23 = vld [vmem:[#allocation26_spill] sm:$0xff] }
 0x12c   : > { %v3925_v47 = vpack.c.bf16 %v1455_v4, %v1454_v11  ;;  %v645_v11 = vadd.f32 %v2820_v20, %v3459_v41  ;;  %v637_v20 = vadd.f32 %v3459_v41, %v636_v18 }
 0x12d   : > { %v1338_v17 = vpop.permute.xlu1 %1337  ;;  %v1015_v38 = vsel %vm996_vm3, %v974_v58, %v4857_v34  ;;  %v1342_v57 = vpop.permute.xlu0 %1341  ;;  %v1262_v32 = vrot.slane %v3923_v15, 1  ;;  %v1260_v25 = vrot.slane %v3933_v19, 1 }
 0x12e   : > { %v1456_v4 = vmul.f32 %v1338_v17, %v3644_v9  ;;  %1713 = vrot.lane.b32.xlu0 %v4850_v3, %s2967_s16  ;;  %1682 = vrot.lane.b32.xlu1 %v3891_v29, %s2966_s15  ;;  %v1457_v34 = vmul.f32 %v1342_v57, %v3648_v16  ;;  %v2821_v9 = vpop.f32.mrb[34].mxu0  ;;  %v3953_v17 = vsel %vm1267_vm2, %v1258_v44, %v1259_v14  ;;  %v685_v60 = vmax.f32 %v645_v11, 0.0  ;;  %v4861_v11 = vld [vmem:[#allocation10_spill] sm:$0xff] }
 0x12f   : > { %4858 = vst [vmem:[#allocation3_spill] sm:$0xff] %v3953_v17  ;;  %v648_v3 = vadd.f32 %v2821_v9, %v3459_v41  ;;  %v639_v26 = vpop.f32.mrb[35].mxu0  ;;  %v3959_v59 = vsel %vm1267_vm2, %v1261_v37, %v1262_v32  ;;  %v683_v16 = vmax.f32 %v637_v20, 0.0  ;;  %v1016_v44 = vsel %vm996_vm3, %v4860_v62, %v974_v58 }
 0x130   : > { %4859 = vst [vmem:[#allocation41_spill] sm:$0xff] %v3959_v59  ;;  %v3961_v51 = vpack.c.bf16 %v1457_v34, %v1456_v4  ;;  %v640_v57 = vadd.f32 %v3459_v41, %v639_v26  ;;  %v3969_v9 = vmul.f32 %v4861_v11, %v685_v60  ;;  %v4863_v4 = vld [vmem:[#allocation19_spill] sm:$0xff]  ;;  %v3978_v26 = vsel %vm1267_vm2, %v1259_v14, %v1260_v25  ;;  %v4864_v41 = vld [vmem:[#allocation8_spill] sm:$0xff]  ;;  %v4866_v60 = vld [vmem:[#allocation9_spill] sm:$0xff] }
 0x131   : > { %v1346_v18 = vpop.permute.xlu1 %1345  ;;  %v686_v17 = vmax.f32 %v648_v3, 0.0  ;;  %v1350_v52 = vpop.permute.xlu0 %1349  ;;  %v3981_v35 = vmul.f32 %v4864_v41, %v683_v16  ;;  %v3986_v58 = vsel %vm1267_vm2, %v1260_v25, %v1261_v37  ;;  %v4873_v59 = vrot.slane %v3479_v55, 1 }
 0x132   : > { %v1458_v31 = vmul.f32 %v1346_v18, %v4862_v23  ;;  %1746 = vrot.lane.b32.xlu0 %v4863_v4, %s2968_s17  ;;  %1715 = vrot.lane.b32.xlu1 %v3669_v46, %s2967_s16  ;;  %v684_v62 = vmax.f32 %v640_v57, 0.0  ;;  %v1459_v3 = vmul.f32 %v1350_v52, %v3689_v24  ;;  %4865 = vst [vmem:[#allocation10_spill] sm:$0xff] %v3986_v58  ;;  %v4791_v23 = vrot.slane %v3923_v15, 7  ;;  %v4867_v18 = vld [vmem:[#allocation7_spill] sm:$0xff] }
 0x133   : > { %v3990_v34 = vmul.f32 %v4866_v60, %v686_v17  ;;  %v1265_v20 = vrot.slane %v3969_v9, 1  ;;  %v992_v14 = vrot.slane %v3969_v9, 7  ;;  %v1263_v24 = vrot.slane %v3981_v35, 1  ;;  %v4869_v17 = vld [vmem:[#allocation18_spill] sm:$0xff] }
 0x134   : > { %v3995_v11 = vmul.f32 %v4867_v18, %v684_v62  ;;  %v3997_v16 = vpack.c.bf16 %v1459_v3, %v1458_v31  ;;  %v990_v52 = vrot.slane %v3981_v35, 7  ;;  %v4870_v62 = vld [vmem:[#allocation15_spill] sm:$0xff] }
 0x135   : > { %v1354_v57 = vpop.permute.xlu1 %1353  ;;  %v1358_v37 = vpop.permute.xlu0 %1357  ;;  %v1266_v41 = vrot.slane %v3990_v34, 1  ;;  %v993_v31 = vrot.slane %v3990_v34, 7  ;;  %v1194_v3 = vmul.f32 %v4870_v62, %v1015_v38  ;;  %v4012_v18 = vsel %vm1267_vm2, %v1262_v32, %v1263_v24 }
 0x136   : > { %4868 = vst [vmem:[#allocation26_spill] sm:$0xff] %v3997_v16  ;;  %v1460_v25 = vmul.f32 %v1354_v57, %v3704_v63  ;;  %1779 = vrot.lane.b32.xlu0 %v3891_v29, %s2969_s19  ;;  %1748 = vrot.lane.b32.xlu1 %v4869_v17, %s2968_s17  ;;  %v1461_v60 = vmul.f32 %v1358_v37, %v3708_v36  ;;  %4871 = vst [vmem:[#allocation19_spill] sm:$0xff] %v4012_v18  ;;  %v1264_v63 = vrot.slane %v3995_v11, 1 }
 0x137   : > { %v991_v57 = vrot.slane %v3995_v11, 7  ;;  %v4020_v16 = vsel %vm996_vm3, %v4791_v23, %v990_v52  ;;  %v4026_v38 = vsel %vm1267_vm2, %v1266_v41, %v4873_v59  ;;  %v4030_v36 = vsel %vm996_vm3, %v992_v14, %v993_v31  ;;  %v4876_v59 = vld [vmem:[#allocation14_spill] sm:$0xff] }
 0x138   : > { %4872 = vst [vmem:[#allocation8_spill] sm:$0xff] %v4020_v16  ;;  %4874 = vst [vmem:[#allocation9_spill] sm:$0xff] %v4026_v38  ;;  %v4034_v32 = vsel %vm1267_vm2, %v1265_v20, %v1266_v41  ;;  %v4036_v37 = vpack.c.bf16 %v1461_v60, %v1460_v25  ;;  %v4040_v23 = vsel %vm1267_vm2, %v1263_v24, %v1264_v63  ;;  %v979_v18 = vrot.slane %v3807_v0, 7  ;;  %v4878_v41 = vld [vmem:[#allocation11_spill] sm:$0xff] }
 0x139   : > { %4875 = vst [vmem:[#allocation7_spill] sm:$0xff] %v4030_v36  ;;  %v1362_v62 = vpop.permute.xlu1 %1361  ;;  %v4044_v16 = vsel %vm996_vm3, %v990_v52, %v991_v57  ;;  %v1193_v38 = vmul.f32 %v4876_v59, %v1016_v44  ;;  %v1366_v58 = vpop.permute.xlu0 %1365  ;;  %v4055_v24 = vsel %vm1267_vm2, %v1264_v63, %v1265_v20  ;;  %v4059_v52 = vsel %vm996_vm3, %v991_v57, %v992_v14  ;;  %v4887_v59 = vld [vmem:[#allocation17_spill] sm:$0xff] }
 0x13a   : > { %v1462_v36 = vmul.f32 %v1362_v62, %v3695_v39  ;;  %1781 = vrot.lane.b32.xlu0 %v3925_v47, %s2969_s19  ;;  %1522 = vrot.lane.b32.xlu1 %v4863_v4, %s2963_s28  ;;  %v1463_v44 = vmul.f32 %v1366_v58, %v3757_v2  ;;  %v4877_v25 = vrot.slane %v3479_v55, 7  ;;  %v4068_v60 = vmul.f32 %v4878_v41, %v3868_v5  ;;  %v4880_v62 = vld [vmem:[#allocation12_spill] sm:$0xff]  ;;  %v2934_v41 = vld [vmem:[%s4772_s4 + $0x20] ss:$0 sps:$4 sm:$0xff]  }
 0x13b   : > { %v4070_v4 = vpack.c.bf16 %v1194_v3, %v1193_v38  ;;  %v4077_v14 = vpack.c.bf16 %v3737_v8, %v3724_v56  ;;  %v4882_v2 = vrot.slane %v3732_v45, 7  ;;  %v4883_v55 = vrot.slane %v3711_v50, 7  ;;  %v4886_v38 = vld [vmem:[#allocation16_spill] sm:$0xff]  ;;  %2865 = vmatprep.subr.msk.bf16.mxu1 %vm2167_vm4, %v2934_v41 }
 0x13c   : > { %v1032_v39 = vsel %vm996_vm3, %v993_v31, %v4877_v25  ;;  %4879 = vst [vmem:[#allocation18_spill] sm:$0xff] %v4068_v60  ;;  %v4885_v5 = vrot.slane %v3737_v8, 7  ;;  %v4091_v63 = vpack.c.bf16 %v1463_v44, %v1462_v36  ;;  %v981_v8 = vrot.slane %v3800_v28, 7 }
 0x13d   : > { %v4073_v20 = vmul.f32 %v4880_v62, %v1032_v39  ;;  %v1013_v58 = vsel %vm996_vm3, %v4883_v55, %v4882_v2  ;;  %v4884_v31 = vmov %v4883_v55  ;;  %v1370_v57 = vpop.permute.xlu1 %1369  ;;  %v4097_v39 = vpack.c.bf16 %v3732_v45, %v3711_v50  ;;  %v1374_v44 = vpop.permute.xlu0 %1373 }
 0x13e   : > { %v1014_v3 = vsel %vm996_vm3, %v4885_v5, %v4884_v31  ;;  %v1196_v25 = vmul.f32 %v4887_v59, %v1013_v58  ;;  %v984_v62 = vrot.slane %v3837_v10, 7  ;;  %v1464_v36 = vmul.f32 %v1370_v57, %v3772_v30  ;;  %1570 = vrot.lane.b32.xlu0 %v3891_v29, %s2964_s11  ;;  %1524 = vrot.lane.b32.xlu1 %v4869_v17, %s2963_s28 }
 0x13f   : > { %4881 = vst [vmem:[#allocation15_spill] sm:$0xff] %v4073_v20  ;;  %v1195_v56 = vmul.f32 %v4886_v38, %v1014_v3  ;;  %v982_v2 = vrot.slane %v3855_v6, 7  ;;  %v985_v55 = vrot.slane %v3858_v12, 7  ;;  %v1465_v58 = vmul.f32 %v1374_v44, %v3776_v7  ;;  %v4892_v44 = vld [vmem:[#allocation22_spill] sm:$0xff] }
 0x140   : > { %v983_v30 = vrot.slane %v3871_v61, 7  ;;  %v4888_v5 = vrot.slane %v3792_v43, 7  ;;  %v4890_v57 = vrot.slane %v3732_v45, 7  ;;  %v4133_v20 = vpack.c.bf16 %v3807_v0, %v3792_v43 }
 0x141   : > { %v4114_v31 = vpack.c.bf16 %v1196_v25, %v1195_v56  ;;  %v4127_v59 = vpack.c.bf16 %v1465_v58, %v1464_v36  ;;  %v1378_v7 = vpop.permute.xlu1 %1377  ;;  %v4891_v56 = vld [vmem:[#allocation21_spill] sm:$0xff]  ;;  %v987_v45 = vrot.slane %v3933_v19, 7  ;;  %v2169_v36 = vsel %vm2167_vm4, %v2934_v41, 0 }
 0x142   : > { %v1011_v29 = vsel %vm996_vm3, %v4888_v5, %v979_v18  ;;  %v4889_v3 = vmov %v4888_v5  ;;  %v986_v5 = vrot.slane %v3915_v21, 7  ;;  %v1466_v60 = vmul.f32 %v1378_v7, %v3763_v1  ;;  %1618 = vrot.lane.b32.xlu0 %v3669_v46, %s2965_s14  ;;  %1572 = vrot.lane.b32.xlu1 %v3925_v47, %s2964_s11 }
 0x143   : > { %v1012_v38 = vsel %vm996_vm3, %v4890_v57, %v4889_v3  ;;  %v1198_v50 = vmul.f32 %v4892_v44, %v1011_v29  ;;  %v1382_v3 = vpop.permute.xlu0 %1381  ;;  %2831 = vmatpush3.bf16.msra.mxu1 %v2169_v36  ;;  %v4893_v43 = vrot.slane %v3779_v13, 7  ;;  %v1007_v41 = vsel %vm996_vm3, %v982_v2, %v983_v30 }
 0x144   : > { %v1197_v25 = vmul.f32 %v4891_v56, %v1012_v38  ;;  %v1467_v58 = vmul.f32 %v1382_v3, %v3825_v42  ;;  %v4895_v38 = vld [vmem:[#allocation23_spill] sm:$0xff]  ;;  %v4896_v56 = vld [vmem:[#allocation24_spill] sm:$0xff]  ;;  %v4157_v42 = vpack.c.bf16 %v3800_v28, %v3779_v13  ;;  %v1008_v3 = vsel %vm996_vm3, %v981_v8, %v982_v2 }
 0x145   : > { %v1009_v0 = vsel %vm996_vm3, %v4893_v43, %v981_v8  ;;  %v4894_v1 = vmov %v4893_v43  ;;  %v1202_v36 = vmul.f32 %v3653_v27, %v1007_v41  ;;  %v988_v43 = vrot.slane %v3901_v48, 7  ;;  %v4897_v8 = vld [vmem:[#allocation27_spill] sm:$0xff] }
 0x146   : > { %v4143_v29 = vpack.c.bf16 %v1198_v50, %v1197_v25  ;;  %v1010_v57 = vsel %vm996_vm3, %v979_v18, %v4894_v1  ;;  %v1200_v44 = vmul.f32 %v4896_v56, %v1009_v0  ;;  %v4161_v50 = vpack.c.bf16 %v1467_v58, %v1466_v60  ;;  %v1386_v25 = vpop.permute.xlu1 %1385  ;;  %1651 = vrot.lane.b32.xlu0 %v4869_v17, %s2962_s27  ;;  %v4898_v58 = vld [vmem:[#allocation28_spill] sm:$0xff]  ;;  %v4899_v1 = vld [vmem:[#allocation29_spill] sm:$0xff] }
 0x147   : > { %v1199_v7 = vmul.f32 %v4895_v38, %v1010_v57  ;;  %v4168_v18 = vpack.c.bf16 %v3871_v61, %v3855_v6  ;;  %v1468_v13 = vmul.f32 %v1386_v25, %v3842_v53  ;;  %v1390_v28 = vpop.permute.xlu0 %1389  ;;  %1620 = vrot.lane.b32.xlu1 %v3697_v40, %s2965_s14  ;;  %v1201_v2 = vmul.f32 %v4897_v8, %v1008_v3  ;;  %v4901_v25 = vld [vmem:[#allocation30_spill] sm:$0xff] }
 0x148   : > { %v1469_v27 = vmul.f32 %v1390_v28, %v3852_v22  ;;  %v1005_v6 = vsel %vm996_vm3, %v984_v62, %v985_v55  ;;  %v1006_v61 = vsel %vm996_vm3, %v983_v30, %v984_v62  ;;  %v4186_v53 = vpack.c.bf16 %v3858_v12, %v3837_v10  ;;  %v4905_v28 = vld [vmem:[#allocation34_spill] sm:$0xff] }
 0x149   : > { %v4176_v60 = vpack.c.bf16 %v1200_v44, %v1199_v7  ;;  %v4188_v17 = vpack.c.bf16 %v1202_v36, %v1201_v2  ;;  %v1203_v0 = vmul.f32 %v4898_v58, %v1006_v61  ;;  %v1204_v57 = vmul.f32 %v4899_v1, %v1005_v6  ;;  %v4900_v44 = vld [vmem:[#allocation31_spill] sm:$0xff]  ;;  %v4904_v36 = vld [vmem:[#allocation32_spill] sm:$0xff] }
 0x14a   : > { %v1003_v38 = vsel %vm996_vm3, %v986_v5, %v987_v45  ;;  %v4194_v22 = vpack.c.bf16 %v1469_v27, %v1468_v13  ;;  %v1394_v7 = vpop.permute.xlu1 %1393  ;;  %v1004_v56 = vsel %vm996_vm3, %v985_v55, %v986_v5  ;;  %v4201_v10 = vpack.c.bf16 %v3933_v19, %v3915_v21  ;;  %1684 = vrot.lane.b32.xlu0 %v3925_v47, %s2966_s15  ;;  %v4902_v55 = vld [vmem:[#allocation13_spill] sm:$0xff]  ;;  %v4907_v61 = vld [vmem:[#allocation4_spill] sm:$0xff] }
 0x14b   : > { %v1206_v62 = vmul.f32 %v3713_v33, %v1003_v38  ;;  %v1470_v12 = vmul.f32 %v1394_v7, %v3831_v49  ;;  %v1398_v30 = vpop.permute.xlu0 %1397  ;;  %1653 = vrot.lane.b32.xlu1 %v4900_v44, %s2962_s27  ;;  %v4208_v41 = vpack.c.bf16 %v1204_v57, %v1203_v0  ;;  %v1205_v3 = vmul.f32 %v4901_v25, %v1004_v56  ;;  %v4908_v0 = vld [vmem:[#allocation2_spill] sm:$0xff]  ;;  %v4909_v38 = vld [vmem:[#allocation35_spill] sm:$0xff] }
 0x14c   : > { %v1471_v5 = vmul.f32 %v1398_v30, %v4902_v55  ;;  %v4903_v33 = vrot.slane %v3923_v15, 7  ;;  %v1002_v49 = vsel %vm996_vm3, %v987_v45, %v988_v43  ;;  %v4220_v47 = vpack.c.bf16 %v3923_v15, %v3901_v48  ;;  %v4906_v45 = vld [vmem:[#allocation6_spill] sm:$0xff]  ;;  %v4910_v7 = vld [vmem:[#allocation3_spill] sm:$0xff] }
 0x14d   : > { %v4222_v19 = vpack.c.bf16 %v1206_v62, %v1205_v3  ;;  %v1207_v13 = vmul.f32 %v4904_v36, %v1002_v49  ;;  %v4228_v2 = vpack.c.bf16 %v3995_v11, %v3981_v35  ;;  %v957_v54 = vpack.c.bf16 %v3990_v34, %v3969_v9  ;;  %v4911_v3 = vld [vmem:[#allocation33_spill] sm:$0xff]  ;;  %v4912_v55 = vld [vmem:[#allocation10_spill] sm:$0xff] }
 0x14e   : > { %v1001_v21 = vsel %vm996_vm3, %v988_v43, %v4903_v33  ;;  %v4230_v27 = vpack.c.bf16 %v1471_v5, %v1470_v12  ;;  %v1402_v6 = vpop.permute.xlu1 %1401  ;;  %1717 = vrot.lane.b32.xlu0 %v3697_v40, %s2967_s16  ;;  %v4913_v49 = vld [vmem:[#allocation41_spill] sm:$0xff] }
 0x14f   : > { %v1208_v8 = vmul.f32 %v4905_v28, %v1001_v21  ;;  %v1472_v43 = vmul.f32 %v1402_v6, %v4906_v45  ;;  %v1406_v48 = vpop.permute.xlu0 %1405  ;;  %1686 = vrot.lane.b32.xlu1 %v3961_v51, %s2966_s15  ;;  %v4914_v28 = vld [vmem:[#allocation26_spill] sm:$0xff] }
 0x150   : > { %v1473_v35 = vmul.f32 %v1406_v48, %v4907_v61  ;;  %v4917_v48 = vld [vmem:[#allocation36_spill] sm:$0xff] }
 0x151   : > { %v4239_v15 = vpack.c.bf16 %v1208_v8, %v1207_v13 }
 0x152   : > { %v4242_v11 = vpack.c.bf16 %v1473_v35, %v1472_v43  ;;  %v1410_v58 = vpop.permute.xlu1 %1409  ;;  %1750 = vrot.lane.b32.xlu0 %v4900_v44, %s2968_s17  ;;  %v4916_v43 = vld [vmem:[#allocation8_spill] sm:$0xff] }
 0x153   : > { %v1474_v1 = vmul.f32 %v1410_v58, %v4908_v0  ;;  %v1414_v57 = vpop.permute.xlu0 %1413  ;;  %1719 = vrot.lane.b32.xlu1 %v4909_v38, %s2967_s16  ;;  %v1209_v61 = vmul.f32 %v4917_v48, %v4916_v43 }
 0x154   : > { %v1475_v56 = vmul.f32 %v1414_v57, %v4910_v7 }
 0x156   : > { %v4250_v62 = vpack.c.bf16 %v1475_v56, %v1474_v1  ;;  %v1418_v12 = vpop.permute.xlu1 %1417  ;;  %1783 = vrot.lane.b32.xlu0 %v3961_v51, %s2969_s19  ;;  %v4919_v56 = vld [vmem:[#allocation37_spill] sm:$0xff] }
 0x157   : > { %v1476_v30 = vmul.f32 %v1418_v12, %v3978_v26  ;;  %v1422_v25 = vpop.permute.xlu0 %1421  ;;  %1752 = vrot.lane.b32.xlu1 %v4911_v3, %s2968_s17  ;;  %v4915_v26 = vld [vmem:[#allocation19_spill] sm:$0xff]  ;;  %v4291_v12 = vmul.f32 %v4919_v56, %v4059_v52 }
 0x158   : > { %v1477_v5 = vmul.f32 %v1422_v25, %v4912_v55 }
 0x15a   : > { %v4258_v33 = vpack.c.bf16 %v1477_v5, %v1476_v30  ;;  %v1426_v21 = vpop.permute.xlu1 %1425  ;;  %1785 = vrot.lane.b32.xlu0 %v4914_v28, %s2969_s19  ;;  %v4920_v30 = vld [vmem:[#allocation7_spill] sm:$0xff]  ;;  %v4922_v5 = vld [vmem:[#allocation9_spill] sm:$0xff] }
 0x15b   : > { %v1478_v36 = vmul.f32 %v1426_v21, %v4913_v49  ;;  %v1430_v13 = vpop.permute.xlu0 %1429  ;;  %1526 = vrot.lane.b32.xlu1 %v4900_v44, %s2963_s28 }
 0x15c   : > { %v1479_v8 = vmul.f32 %v1430_v13, %v4915_v26 }
 0x15e   : > { %v4266_v6 = vpack.c.bf16 %v1479_v8, %v1478_v36  ;;  %v1167_v45 = vpop.permute.xlu1 %1166  ;;  %1574 = vrot.lane.b32.xlu0 %v3961_v51, %s2964_s11  ;;  %v4923_v36 = vld [vmem:[#allocation40_spill] sm:$0xff] }
 0x15f   : > { %1528 = vrot.lane.b32.xlu1 %v4911_v3, %s2963_s28  ;;  %v1210_v35 = vmul.f32 %v1167_v45, %v4044_v16  ;;  %v1434_v58 = vpop.permute.xlu0 %1433  ;;  %v4918_v16 = vld [vmem:[#allocation39_spill] sm:$0xff] }
 0x160   : > { %v1480_v51 = vmul.f32 %v1434_v58, %v4040_v23  ;;  %v4921_v23 = vld [vmem:[#allocation38_spill] sm:$0xff] }
 0x161   : > { %v4275_v0 = vpack.c.bf16 %v1210_v35, %v1209_v61  ;;  %v4925_v61 = vld [vmem:[#allocation18_spill] sm:$0xff]  ;;  %v4926_v35 = vld [vmem:[#allocation15_spill] sm:$0xff] }
 0x162   : > { %1622 = vrot.lane.b32.xlu0 %v4909_v38, %s2965_s14  ;;  %v4927_v58 = vpack.c.bf16 %v4925_v61, %v4926_v35 }
 0x163   : > { %1576 = vrot.lane.b32.xlu1 %v4914_v28, %s2964_s11  ;;  %v1438_v44 = vpop.permute.xlu1 %1437 }
 0x164   : > { %v1481_v1 = vmul.f32 %v1438_v44, %v4055_v24  ;;  %v1446_v24 = vpop.permute.xlu0 %1445 }
 0x165   : > { %v4303_v21 = vmul.f32 %v1446_v24, %v4922_v5 }
 0x166   : > { %v4283_v57 = vpack.c.bf16 %v1481_v1, %v1480_v51  ;;  %1655 = vrot.lane.b32.xlu0 %v4911_v3, %s2962_s27 }
 0x167   : > { %1624 = vrot.lane.b32.xlu1 %v4918_v16, %s2965_s14 }
 0x168   : > { %v1175_v7 = vpop.permute.xlu1 %1174 }
 0x169   : > { %v4294_v25 = vmul.f32 %v1175_v7, %v4920_v30 }
 0x16a   : > { %1688 = vrot.lane.b32.xlu0 %v4914_v28, %s2966_s15  ;;  %v1648_v28 = vpop.permute.xlu0 %1647 }
 0x16b   : > { %1657 = vrot.lane.b32.xlu1 %v4921_v23, %s2962_s27  ;;  %v1230_v3 = vpack.c.bf16 %v4294_v25, %v4291_v12 }
 0x16d   : > { %v1442_v55 = vpop.permute.xlu1 %1441 }
 0x16e   : > { %v4306_v52 = vmul.f32 %v1442_v55, %v4034_v32  ;;  %1721 = vrot.lane.b32.xlu0 %v4918_v16, %s2967_s16  ;;  %v4924_v32 = vld [vmem:[#allocation5_spill] sm:$0xff] }
 0x16f   : > { %1690 = vrot.lane.b32.xlu1 %v4036_v37, %s2966_s15 }
 0x170   : > { %v1501_v49 = vpack.c.bf16 %v4303_v21, %v4306_v52 }
 0x171   : > { %v1521_v13 = vpop.permute.xlu1 %1520 }
 0x172   : > { %1754 = vrot.lane.b32.xlu0 %v4921_v23, %s2968_s17 }
 0x173   : > { %1723 = vrot.lane.b32.xlu1 %v4923_v36, %s2967_s16 }
 0x176   : > { %1787 = vrot.lane.b32.xlu0 %v4036_v37, %s2969_s19 }
 0x177   : > { %1756 = vrot.lane.b32.xlu1 %v4924_v32, %s2968_s17 }
 0x17a   : > { %1789 = vrot.lane.b32.xlu0 %v4091_v63, %s2969_s19 }
 0x17b   : > { %1530 = vrot.lane.b32.xlu1 %v4921_v23, %s2963_s28 }
 0x17e   : > { %1578 = vrot.lane.b32.xlu0 %v4036_v37, %s2964_s11  ;;  %v1519_v37 = vpop.permute.xlu1 %1518 }
 0x17f   : > { %1532 = vrot.lane.b32.xlu1 %v4924_v32, %s2963_s28  ;;  %v1814_v44 = vsel %vm1811_vm6, %v4927_v58, %v1519_v37 }
 0x182   : > { %1626 = vrot.lane.b32.xlu0 %v4923_v36, %s2965_s14  ;;  %v1650_v26 = vpop.permute.xlu1 %1649 }
 0x183   : > { %1580 = vrot.lane.b32.xlu1 %v4091_v63, %s2964_s11 }
 0x186   : > { %1659 = vrot.lane.b32.xlu0 %v4924_v32, %s2962_s27 }
 0x187   : > { %1628 = vrot.lane.b32.xlu1 %v4070_v4, %s2965_s14 }
 0x18a   : > { %1692 = vrot.lane.b32.xlu0 %v4091_v63, %s2966_s15 }
 0x18b   : > { %1661 = vrot.lane.b32.xlu1 %v4077_v14, %s2962_s27 }
 0x18e   : > { %1725 = vrot.lane.b32.xlu0 %v4070_v4, %s2967_s16 }
 0x18f   : > { %1694 = vrot.lane.b32.xlu1 %v4127_v59, %s2966_s15 }
 0x192   : > { %1758 = vrot.lane.b32.xlu0 %v4077_v14, %s2968_s17 }
 0x193   : > { %1727 = vrot.lane.b32.xlu1 %v4114_v31, %s2967_s16 }
 0x194   : > { %v1567_v8 = vpop.permute.xlu0 %1566 }
 0x196   : > { %1791 = vrot.lane.b32.xlu0 %v4127_v59, %s2969_s19 }
 0x197   : > { %1760 = vrot.lane.b32.xlu1 %v4097_v39, %s2968_s17 }
 0x198   : > { %v1615_v63 = vpop.permute.xlu0 %1614  ;;  %v1569_v45 = vpop.permute.xlu1 %1568 }
 0x19a   : > { %1793 = vrot.lane.b32.xlu0 %v4161_v50, %s2969_s19 }
 0x19b   : > { %1534 = vrot.lane.b32.xlu1 %v4077_v14, %s2963_s28  ;;  %v1862_v14 = vsel %vm1860_vm5, %v1814_v44, %v1567_v8 }
 0x19c   : > { %v1681_v43 = vpop.permute.xlu0 %1680  ;;  %v1617_v48 = vpop.permute.xlu1 %1616  ;;  %v1895_v7 = vsel %vm1893_vm7, %v1862_v14, %v1615_v63 }
 0x19d   : > { %v1928_v55 = vsel %vm1926_vm8, %v1895_v7, %v1648_v28 }
 0x19e   : > { %1582 = vrot.lane.b32.xlu0 %v4127_v59, %s2964_s11  ;;  %v4928_v59 = vld [vmem:[#allocation20_spill] sm:$0xff]  ;;  %v1961_v5 = vsel %vm1959_vm9, %v1928_v55, %v1681_v43 }
 0x19f   : > { %1536 = vrot.lane.b32.xlu1 %v4097_v39, %s2963_s28  ;;  %v1817_v56 = vsel %vm1811_vm6, %v4928_v59, %v1521_v13 }
 0x1a0   : > { %v1714_v51 = vpop.permute.xlu0 %1713  ;;  %v1683_v1 = vpop.permute.xlu1 %1682  ;;  %v1864_v24 = vsel %vm1860_vm5, %v1817_v56, %v1569_v45 }
 0x1a1   : > { %v1897_v32 = vsel %vm1893_vm7, %v1864_v24, %v1617_v48  ;;  %v1994_v13 = vsel %vm1992_vm10, %v1961_v5, %v1714_v51 }
 0x1a2   : > { %1630 = vrot.lane.b32.xlu0 %v4114_v31, %s2965_s14  ;;  %v1930_v28 = vsel %vm1926_vm8, %v1897_v32, %v1650_v26 }
 0x1a3   : > { %1584 = vrot.lane.b32.xlu1 %v4161_v50, %s2964_s11  ;;  %v1963_v43 = vsel %vm1959_vm9, %v1930_v28, %v1683_v1 }
 0x1a4   : > { %v1747_v30 = vpop.permute.xlu0 %1746  ;;  %v1716_v23 = vpop.permute.xlu1 %1715 }
 0x1a5   : > { %v2027_v37 = vsel %vm2025_vm11, %v1994_v13, %v1747_v30 }
 0x1a6   : > { %1663 = vrot.lane.b32.xlu0 %v4097_v39, %s2962_s27  ;;  %v1996_v39 = vsel %vm1992_vm10, %v1963_v43, %v1716_v23  ;;  %v4929_v23 = vld [vmem:[#allocation25_spill] sm:$0xff] }
 0x1a7   : > { %1632 = vrot.lane.b32.xlu1 %v4143_v29, %s2965_s14 }
 0x1a8   : > { %v1780_v8 = vpop.permute.xlu0 %1779  ;;  %v1749_v63 = vpop.permute.xlu1 %1748 }
 0x1a9   : > { %v2060_v45 = vsel %vm2058_vm12, %v2027_v37, %v1780_v8  ;;  %v2029_v48 = vsel %vm2025_vm11, %v1996_v39, %v1749_v63 }
 0x1aa   : > { %1696 = vrot.lane.b32.xlu0 %v4161_v50, %s2966_s15  ;;  %2832 = vmatprep.mubr.msk.bf16.mxu1 %vm2134_vm13, %v2060_v45 }
 0x1ab   : > { %1665 = vrot.lane.b32.xlu1 %v4133_v20, %s2962_s27 }
 0x1ac   : > { %v1782_v61 = vpop.permute.xlu0 %1781  ;;  %v1523_v35 = vpop.permute.xlu1 %1522 }
 0x1ad   : > { %v2062_v26 = vsel %vm2058_vm12, %v2029_v48, %v1782_v61  ;;  %v1820_v24 = vsel %vm1811_vm6, %v4929_v23, %v1523_v35 }
 0x1ae   : > { %1729 = vrot.lane.b32.xlu0 %v4143_v29, %s2967_s16  ;;  %2833 = vmatmul.mubr.msk.bf16.vlgmr.msra.gmra.mrb[0].mxu1 %vm2134_vm13, %v2062_v26 }
 0x1af   : > { %1698 = vrot.lane.b32.xlu1 %v4194_v22, %s2966_s15 }
 0x1b0   : > { %v1571_v50 = vpop.permute.xlu0 %1570  ;;  %v1525_v58 = vpop.permute.xlu1 %1524 }
 0x1b1   : > { %v1823_v13 = vsel %vm1811_vm6, %v3669_v46, %v1525_v58 }
 0x1b2   : > { %1762 = vrot.lane.b32.xlu0 %v4133_v20, %s2968_s17 }
 0x1b3   : > { %1731 = vrot.lane.b32.xlu1 %v4176_v60, %s2967_s16 }
 0x1b4   : > { %v1619_v44 = vpop.permute.xlu0 %1618  ;;  %v1573_v51 = vpop.permute.xlu1 %1572 }
 0x1b5   : > { %v1868_v8 = vsel %vm1860_vm5, %v1823_v13, %v1573_v51 }
 0x1b6   : > { %1795 = vrot.lane.b32.xlu0 %v4194_v22, %s2969_s19 }
 0x1b7   : > { %1764 = vrot.lane.b32.xlu1 %v4157_v42, %s2968_s17 }
 0x1b8   : > { %v1652_v1 = vpop.permute.xlu0 %1651 }
 0x1b9   : > { %v1621_v14 = vpop.permute.xlu1 %1620 }
 0x1ba   : > { %1797 = vrot.lane.b32.xlu0 %v4230_v27, %s2969_s19  ;;  %v1901_v28 = vsel %vm1893_vm7, %v1868_v8, %v1621_v14 }
 0x1bb   : > { %1538 = vrot.lane.b32.xlu1 %v4133_v20, %s2963_s28  ;;  %v1866_v20 = vsel %vm1860_vm5, %v1820_v24, %v1571_v50 }
 0x1bc   : > { %v1685_v7 = vpop.permute.xlu0 %1684  ;;  %v1899_v55 = vsel %vm1893_vm7, %v1866_v20, %v1619_v44 }
 0x1bd   : > { %v1654_v59 = vpop.permute.xlu1 %1653  ;;  %v1932_v32 = vsel %vm1926_vm8, %v1899_v55, %v1652_v1 }
 0x1be   : > { %1586 = vrot.lane.b32.xlu0 %v4194_v22, %s2964_s11  ;;  %v1965_v37 = vsel %vm1959_vm9, %v1932_v32, %v1685_v7  ;;  %v1934_v46 = vsel %vm1926_vm8, %v1901_v28, %v1654_v59 }
 0x1bf   : > { %1540 = vrot.lane.b32.xlu1 %v4157_v42, %s2963_s28 }
 0x1c0   : > { %v1718_v56 = vpop.permute.xlu0 %1717 }
 0x1c1   : > { %v1687_v30 = vpop.permute.xlu1 %1686  ;;  %v1998_v63 = vsel %vm1992_vm10, %v1965_v37, %v1718_v56 }
 0x1c2   : > { %1634 = vrot.lane.b32.xlu0 %v4176_v60, %s2965_s14  ;;  %v1967_v61 = vsel %vm1959_vm9, %v1934_v46, %v1687_v30 }
 0x1c3   : > { %1588 = vrot.lane.b32.xlu1 %v4230_v27, %s2964_s11 }
 0x1c4   : > { %v1751_v5 = vpop.permute.xlu0 %1750 }
 0x1c5   : > { %v1720_v22 = vpop.permute.xlu1 %1719  ;;  %v2031_v45 = vsel %vm2025_vm11, %v1998_v63, %v1751_v5 }
 0x1c6   : > { %1667 = vrot.lane.b32.xlu0 %v4157_v42, %s2962_s27  ;;  %v2000_v42 = vsel %vm1992_vm10, %v1967_v61, %v1720_v22 }
 0x1c7   : > { %1636 = vrot.lane.b32.xlu1 %v4188_v17, %s2965_s14 }
 0x1c8   : > { %v1784_v43 = vpop.permute.xlu0 %1783 }
 0x1c9   : > { %v1753_v39 = vpop.permute.xlu1 %1752  ;;  %v2064_v48 = vsel %vm2058_vm12, %v2031_v45, %v1784_v43 }
 0x1ca   : > { %1700 = vrot.lane.b32.xlu0 %v4230_v27, %s2966_s15  ;;  %2836 = vmatprep.mubr.msk.bf16.mxu1 %vm2134_vm13, %v2064_v48  ;;  %v2033_v35 = vsel %vm2025_vm11, %v2000_v42, %v1753_v39 }
 0x1cb   : > { %1669 = vrot.lane.b32.xlu1 %v4168_v18, %s2962_s27 }
 0x1cc   : > { %v1786_v26 = vpop.permute.xlu0 %1785 }
 0x1cd   : > { %v1527_v50 = vpop.permute.xlu1 %1526  ;;  %v2066_v58 = vsel %vm2058_vm12, %v2033_v35, %v1786_v26 }
 0x1ce   : > { %1733 = vrot.lane.b32.xlu0 %v4188_v17, %s2967_s16  ;;  %2837 = vmatmul.mubr.msk.bf16.gmra.mrb[4].mxu1 %vm2134_vm13, %v2066_v58  ;;  %v1826_v24 = vsel %vm1811_vm6, %v3697_v40, %v1527_v50 }
 0x1cf   : > { %1702 = vrot.lane.b32.xlu1 %v4242_v11, %s2966_s15 }
 0x1d0   : > { %v1575_v27 = vpop.permute.xlu0 %1574 }
 0x1d1   : > { %v1529_v44 = vpop.permute.xlu1 %1528 }
 0x1d2   : > { %1766 = vrot.lane.b32.xlu0 %v4168_v18, %s2968_s17  ;;  %v1829_v22 = vsel %vm1811_vm6, %v4909_v38, %v1529_v44 }
 0x1d3   : > { %1735 = vrot.lane.b32.xlu1 %v4208_v41, %s2967_s16 }
 0x1d4   : > { %v1623_v51 = vpop.permute.xlu0 %1622 }
 0x1d5   : > { %v1577_v1 = vpop.permute.xlu1 %1576 }
 0x1d6   : > { %1799 = vrot.lane.b32.xlu0 %v4242_v11, %s2969_s19  ;;  %v1872_v40 = vsel %vm1860_vm5, %v1829_v22, %v1577_v1 }
 0x1d7   : > { %1768 = vrot.lane.b32.xlu1 %v4186_v53, %s2968_s17 }
 0x1d8   : > { %v1656_v14 = vpop.permute.xlu0 %1655 }
 0x1d9   : > { %v1625_v7 = vpop.permute.xlu1 %1624 }
 0x1da   : > { %1801 = vrot.lane.b32.xlu0 %v4250_v62, %s2969_s19  ;;  %v1905_v37 = vsel %vm1893_vm7, %v1872_v40, %v1625_v7 }
 0x1db   : > { %1542 = vrot.lane.b32.xlu1 %v4168_v18, %s2963_s28  ;;  %v1870_v18 = vsel %vm1860_vm5, %v1826_v24, %v1575_v27 }
 0x1dc   : > { %v1689_v59 = vpop.permute.xlu0 %1688  ;;  %v1903_v20 = vsel %vm1893_vm7, %v1870_v18, %v1623_v51 }
 0x1dd   : > { %v1658_v56 = vpop.permute.xlu1 %1657  ;;  %v1936_v5 = vsel %vm1926_vm8, %v1903_v20, %v1656_v14 }
 0x1de   : > { %1590 = vrot.lane.b32.xlu0 %v4242_v11, %s2964_s11  ;;  %v1969_v32 = vsel %vm1959_vm9, %v1936_v5, %v1689_v59  ;;  %v1938_v38 = vsel %vm1926_vm8, %v1905_v37, %v1658_v56 }
 0x1df   : > { %1544 = vrot.lane.b32.xlu1 %v4186_v53, %s2963_s28 }
 0x1e0   : > { %v1722_v30 = vpop.permute.xlu0 %1721 }
 0x1e1   : > { %v1691_v23 = vpop.permute.xlu1 %1690  ;;  %v2002_v13 = vsel %vm1992_vm10, %v1969_v32, %v1722_v30 }
 0x1e2   : > { %1638 = vrot.lane.b32.xlu0 %v4208_v41, %s2965_s14  ;;  %v1971_v43 = vsel %vm1959_vm9, %v1938_v38, %v1691_v23 }
 0x1e3   : > { %1592 = vrot.lane.b32.xlu1 %v4250_v62, %s2964_s11 }
 0x1e4   : > { %v1755_v55 = vpop.permute.xlu0 %1754 }
 0x1e5   : > { %v1724_v11 = vpop.permute.xlu1 %1723  ;;  %v2035_v8 = vsel %vm2025_vm11, %v2002_v13, %v1755_v55 }
 0x1e6   : > { %1671 = vrot.lane.b32.xlu0 %v4186_v53, %s2962_s27  ;;  %v2004_v53 = vsel %vm1992_vm10, %v1971_v43, %v1724_v11 }
 0x1e7   : > { %1640 = vrot.lane.b32.xlu1 %v4222_v19, %s2965_s14 }
 0x1e8   : > { %v1788_v63 = vpop.permute.xlu0 %1787 }
 0x1e9   : > { %v1757_v28 = vpop.permute.xlu1 %1756  ;;  %v2068_v45 = vsel %vm2058_vm12, %v2035_v8, %v1788_v63 }
 0x1ea   : > { %1704 = vrot.lane.b32.xlu0 %v4250_v62, %s2966_s15  ;;  %2840 = vmatprep.mubr.msk.bf16.mxu1 %vm2134_vm13, %v2068_v45  ;;  %v2037_v39 = vsel %vm2025_vm11, %v2004_v53, %v1757_v28 }
 0x1eb   : > { %1673 = vrot.lane.b32.xlu1 %v4201_v10, %s2962_s27 }
 0x1ec   : > { %v1790_v46 = vpop.permute.xlu0 %1789 }
 0x1ed   : > { %v1531_v48 = vpop.permute.xlu1 %1530  ;;  %v2070_v61 = vsel %vm2058_vm12, %v2037_v39, %v1790_v46 }
 0x1ee   : > { %1737 = vrot.lane.b32.xlu0 %v4222_v19, %s2967_s16  ;;  %2841 = vmatmul.mubr.msk.bf16.gmra.mrb[8].mxu1 %vm2134_vm13, %v2070_v61  ;;  %v1832_v14 = vsel %vm1811_vm6, %v4918_v16, %v1531_v48 }
 0x1ef   : > { %1706 = vrot.lane.b32.xlu1 %v4258_v33, %s2966_s15 }
 0x1f0   : > { %v1579_v62 = vpop.permute.xlu0 %1578 }
 0x1f1   : > { %v1533_v42 = vpop.permute.xlu1 %1532 }
 0x1f2   : > { %1770 = vrot.lane.b32.xlu0 %v4201_v10, %s2968_s17  ;;  %v1835_v30 = vsel %vm1811_vm6, %v4923_v36, %v1533_v42 }
 0x1f3   : > { %1739 = vrot.lane.b32.xlu1 %v4239_v15, %s2967_s16 }
 0x1f4   : > { %v1627_v35 = vpop.permute.xlu0 %1626 }
 0x1f5   : > { %v1581_v26 = vpop.permute.xlu1 %1580 }
 0x1f6   : > { %1803 = vrot.lane.b32.xlu0 %v4258_v33, %s2969_s19  ;;  %v1876_v16 = vsel %vm1860_vm5, %v1835_v30, %v1581_v26 }
 0x1f7   : > { %1772 = vrot.lane.b32.xlu1 %v4220_v47, %s2968_s17 }
 0x1f8   : > { %v1660_v50 = vpop.permute.xlu0 %1659 }
 0x1f9   : > { %v1629_v58 = vpop.permute.xlu1 %1628 }
 0x1fa   : > { %1805 = vrot.lane.b32.xlu0 %v4266_v6, %s2969_s19  ;;  %v1909_v18 = vsel %vm1893_vm7, %v1876_v16, %v1629_v58 }
 0x1fb   : > { %1546 = vrot.lane.b32.xlu1 %v4201_v10, %s2963_s28  ;;  %v1874_v10 = vsel %vm1860_vm5, %v1832_v14, %v1579_v62 }
 0x1fc   : > { %v1693_v27 = vpop.permute.xlu0 %1692  ;;  %v1907_v7 = vsel %vm1893_vm7, %v1874_v10, %v1627_v35 }
 0x1fd   : > { %v1662_v44 = vpop.permute.xlu1 %1661  ;;  %v1940_v56 = vsel %vm1926_vm8, %v1907_v7, %v1660_v50 }
 0x1fe   : > { %1594 = vrot.lane.b32.xlu0 %v4258_v33, %s2964_s11  ;;  %v1973_v23 = vsel %vm1959_vm9, %v1940_v56, %v1693_v27  ;;  %v1942_v36 = vsel %vm1926_vm8, %v1909_v18, %v1662_v44 }
 0x1ff   : > { %1548 = vrot.lane.b32.xlu1 %v4220_v47, %s2963_s28 }
 0x200   : > { %v1726_v51 = vpop.permute.xlu0 %1725 }
 0x201   : > { %v1695_v1 = vpop.permute.xlu1 %1694  ;;  %v2006_v24 = vsel %vm1992_vm10, %v1973_v23, %v1726_v51 }
 0x202   : > { %1642 = vrot.lane.b32.xlu0 %v4239_v15, %s2965_s14  ;;  %v1975_v22 = vsel %vm1959_vm9, %v1942_v36, %v1695_v1 }
 0x203   : > { %1596 = vrot.lane.b32.xlu1 %v4266_v6, %s2964_s11 }
 0x204   : > { %v1759_v59 = vpop.permute.xlu0 %1758 }
 0x205   : > { %v1728_v33 = vpop.permute.xlu1 %1727  ;;  %v2039_v20 = vsel %vm2025_vm11, %v2006_v24, %v1759_v59 }
 0x206   : > { %1675 = vrot.lane.b32.xlu0 %v4220_v47, %s2962_s27  ;;  %v2008_v47 = vsel %vm1992_vm10, %v1975_v22, %v1728_v33 }
 0x207   : > { %1644 = vrot.lane.b32.xlu1 %v4275_v0, %s2965_s14 }
 0x208   : > { %v1792_v55 = vpop.permute.xlu0 %1791 }
 0x209   : > { %v1761_v11 = vpop.permute.xlu1 %1760  ;;  %v2072_v5 = vsel %vm2058_vm12, %v2039_v20, %v1792_v55 }
 0x20a   : > { %1708 = vrot.lane.b32.xlu0 %v4266_v6, %s2966_s15  ;;  %2844 = vmatprep.mubr.msk.bf16.mxu1 %vm2134_vm13, %v2072_v5  ;;  %v2041_v32 = vsel %vm2025_vm11, %v2008_v47, %v1761_v11 }
 0x20b   : > { %1677 = vrot.lane.b32.xlu1 %v4228_v2, %s2962_s27  ;;  %s2711_s27 = sshll.u32 %s4935_s21, 7 }
 0x20c   : > { %v1794_v40 = vpop.permute.xlu0 %1793  ;;  %s4650_s29 = scalar_lea.vmem %s4774_s6, %s2711_s27 }
 0x20d   : > { %v1535_v13 = vpop.permute.xlu1 %1534  ;;  %v2074_v37 = vsel %vm2058_vm12, %v2041_v32, %v1794_v40 }
 0x20e   : > { %1741 = vrot.lane.b32.xlu0 %v4275_v0, %s2967_s16  ;;  %2845 = vmatmul.mubr.msk.bf16.gmra.mrb[12].mxu1 %vm2134_vm13, %v2074_v37  ;;  %v1838_v45 = vsel %vm1811_vm6, %v4070_v4, %v1535_v13 }
 0x20f   : > { %1710 = vrot.lane.b32.xlu1 %v4283_v57, %s2966_s15 }
 0x210   : > { %v1583_v6 = vpop.permute.xlu0 %1582 }
 0x211   : > { %v1537_v8 = vpop.permute.xlu1 %1536 }
 0x212   : > { %1774 = vrot.lane.b32.xlu0 %v4228_v2, %s2968_s17  ;;  %v1841_v53 = vsel %vm1811_vm6, %v4114_v31, %v1537_v8 }
 0x213   : > { %1743 = vrot.lane.b32.xlu1 %v1230_v3, %s2967_s16 }
 0x214   : > { %v1631_v63 = vpop.permute.xlu0 %1630 }
 0x215   : > { %v1585_v28 = vpop.permute.xlu1 %1584 }
 0x216   : > { %1807 = vrot.lane.b32.xlu0 %v4283_v57, %s2969_s19  ;;  %v1878_v57 = vsel %vm1860_vm5, %v1838_v45, %v1583_v6  ;;  %v1880_v52 = vsel %vm1860_vm5, %v1841_v53, %v1585_v28 }
 0x217   : > { %1776 = vrot.lane.b32.xlu1 %v957_v54, %s2968_s17  ;;  %v1911_v43 = vsel %vm1893_vm7, %v1878_v57, %v1631_v63 }
 0x218   : > { %v1664_v0 = vpop.permute.xlu0 %1663 }
 0x219   : > { %v1633_v38 = vpop.permute.xlu1 %1632  ;;  %v1944_v54 = vsel %vm1926_vm8, %v1911_v43, %v1664_v0 }
 0x21a   : > { %v1913_v39 = vsel %vm1893_vm7, %v1880_v52, %v1633_v38 }
 0x21b   : > { %1809 = vrot.lane.b32.xlu1 %v1501_v49, %s2969_s19 }
 0x21c   : > { %v1697_v2 = vpop.permute.xlu0 %1696 }
 0x21d   : > { %v1666_v12 = vpop.permute.xlu1 %1665  ;;  %v1977_v21 = vsel %vm1959_vm9, %v1944_v54, %v1697_v2 }
 0x21e   : > { %v1946_v61 = vsel %vm1926_vm8, %v1913_v39, %v1666_v12 }
 0x220   : > { %v1730_v25 = vpop.permute.xlu0 %1729 }
 0x221   : > { %v1699_v3 = vpop.permute.xlu1 %1698  ;;  %v2010_v49 = vsel %vm1992_vm10, %v1977_v21, %v1730_v25 }
 0x222   : > { %v1979_v42 = vsel %vm1959_vm9, %v1946_v61, %v1699_v3 }
 0x224   : > { %v1763_v9 = vpop.permute.xlu0 %1762 }
 0x225   : > { %v1732_v34 = vpop.permute.xlu1 %1731  ;;  %v2043_v4 = vsel %vm2025_vm11, %v2010_v49, %v1763_v9 }
 0x226   : > { %v2012_v31 = vsel %vm1992_vm10, %v1979_v42, %v1732_v34 }
 0x228   : > { %v1796_v46 = vpop.permute.xlu0 %1795 }
 0x229   : > { %v1765_v48 = vpop.permute.xlu1 %1764  ;;  %v2076_v62 = vsel %vm2058_vm12, %v2043_v4, %v1796_v46 }
 0x22a   : > { %2848 = vmatprep.mubr.msk.bf16.mxu1 %vm2134_vm13, %v2076_v62  ;;  %v2045_v35 = vsel %vm2025_vm11, %v2012_v31, %v1765_v48 }
 0x22c   : > { %v1798_v26 = vpop.permute.xlu0 %1797 }
 0x22d   : > { %v1539_v50 = vpop.permute.xlu1 %1538  ;;  %v2078_v58 = vsel %vm2058_vm12, %v2045_v35, %v1798_v26 }
 0x22e   : > { %2849 = vmatmul.mubr.msk.bf16.gmra.mrb[16].mxu1 %vm2134_vm13, %v2078_v58  ;;  %v1844_v30 = vsel %vm1811_vm6, %v4143_v29, %v1539_v50 }
 0x230   : > { %v1587_v27 = vpop.permute.xlu0 %1586 }
 0x231   : > { %v1541_v44 = vpop.permute.xlu1 %1540  ;;  %v1882_v23 = vsel %vm1860_vm5, %v1844_v30, %v1587_v27 }
 0x232   : > { %v1847_v55 = vsel %vm1811_vm6, %v4176_v60, %v1541_v44 }
 0x234   : > { %v1635_v51 = vpop.permute.xlu0 %1634 }
 0x235   : > { %v1589_v1 = vpop.permute.xlu1 %1588  ;;  %v1915_v16 = vsel %vm1893_vm7, %v1882_v23, %v1635_v51 }
 0x236   : > { %v1884_v36 = vsel %vm1860_vm5, %v1847_v55, %v1589_v1 }
 0x238   : > { %v1668_v14 = vpop.permute.xlu0 %1667 }
 0x239   : > { %v1637_v10 = vpop.permute.xlu1 %1636  ;;  %v1948_v20 = vsel %vm1926_vm8, %v1915_v16, %v1668_v14  ;;  %v4635_v16 = vld [vmem:[%s4773_s5] ss:$0 sm:$0xff] }
 0x23a   : > { %v1917_v22 = vsel %vm1893_vm7, %v1884_v36, %v1637_v10 }
 0x23c   : > { %v1701_v7 = vpop.permute.xlu0 %1700 }
 0x23d   : > { %v1670_v59 = vpop.permute.xlu1 %1669  ;;  %v1981_v11 = vsel %vm1959_vm9, %v1948_v20, %v1701_v7 }
 0x23e   : > { %v1950_v40 = vsel %vm1926_vm8, %v1917_v22, %v1670_v59 }
 0x240   : > { %v1734_v33 = vpop.permute.xlu0 %1733 }
 0x241   : > { %v1703_v56 = vpop.permute.xlu1 %1702  ;;  %v2014_v5 = vsel %vm1992_vm10, %v1981_v11, %v1734_v33 }
 0x242   : > { %v1983_v37 = vsel %vm1959_vm9, %v1950_v40, %v1703_v56 }
 0x244   : > { %v1767_v24 = vpop.permute.xlu0 %1766 }
 0x245   : > { %v1736_v18 = vpop.permute.xlu1 %1735  ;;  %v2047_v29 = vsel %vm2025_vm11, %v2014_v5, %v1767_v24 }
 0x246   : > { %v2016_v60 = vsel %vm1992_vm10, %v1983_v37, %v1736_v18 }
 0x248   : > { %v1800_v47 = vpop.permute.xlu0 %1799 }
 0x249   : > { %v1769_v32 = vpop.permute.xlu1 %1768  ;;  %v2080_v13 = vsel %vm2058_vm12, %v2047_v29, %v1800_v47 }
 0x24a   : > { %2852 = vmatprep.mubr.msk.bf16.mxu1 %vm2134_vm13, %v2080_v13  ;;  %v2049_v6 = vsel %vm2025_vm11, %v2016_v60, %v1769_v32 }
 0x24c   : > { %v1802_v8 = vpop.permute.xlu0 %1801 }
 0x24d   : > { %v1543_v63 = vpop.permute.xlu1 %1542  ;;  %v2082_v28 = vsel %vm2058_vm12, %v2049_v6, %v1802_v8 }
 0x24e   : > { %2853 = vmatmul.mubr.msk.bf16.gmra.mrb[20].mxu1 %vm2134_vm13, %v2082_v28  ;;  %v1850_v34 = vsel %vm1811_vm6, %v4188_v17, %v1543_v63 }
 0x250   : > { %v1591_v0 = vpop.permute.xlu0 %1590 }
 0x251   : > { %v1545_v38 = vpop.permute.xlu1 %1544  ;;  %v1886_v54 = vsel %vm1860_vm5, %v1850_v34, %v1591_v0 }
 0x252   : > { %v1853_v39 = vsel %vm1811_vm6, %v4208_v41, %v1545_v38 }
 0x254   : > { %v1639_v2 = vpop.permute.xlu0 %1638 }
 0x255   : > { %v1593_v12 = vpop.permute.xlu1 %1592  ;;  %v1919_v53 = vsel %vm1893_vm7, %v1886_v54, %v1639_v2 }
 0x256   : > { %v1888_v46 = vsel %vm1860_vm5, %v1853_v39, %v1593_v12 }
 0x258   : > { %v1672_v25 = vpop.permute.xlu0 %1671 }
 0x259   : > { %v1641_v3 = vpop.permute.xlu1 %1640  ;;  %v1952_v49 = vsel %vm1926_vm8, %v1919_v53, %v1672_v25 }
 0x25a   : > { %v1921_v61 = vsel %vm1893_vm7, %v1888_v46, %v1641_v3 }
 0x25c   : > { %v1705_v45 = vpop.permute.xlu0 %1704 }
 0x25d   : > { %v1674_v57 = vpop.permute.xlu1 %1673  ;;  %v1985_v4 = vsel %vm1959_vm9, %v1952_v49, %v1705_v45 }
 0x25e   : > { %v1954_v31 = vsel %vm1926_vm8, %v1921_v61, %v1674_v57 }
 0x260   : > { %v1738_v43 = vpop.permute.xlu0 %1737 }
 0x261   : > { %v1707_v9 = vpop.permute.xlu1 %1706  ;;  %v2018_v48 = vsel %vm1992_vm10, %v1985_v4, %v1738_v43 }
 0x262   : > { %v1987_v26 = vsel %vm1959_vm9, %v1954_v31, %v1707_v9 }
 0x264   : > { %v1771_v21 = vpop.permute.xlu0 %1770 }
 0x265   : > { %v1740_v52 = vpop.permute.xlu1 %1739  ;;  %v2051_v17 = vsel %vm2025_vm11, %v2018_v48, %v1771_v21 }
 0x266   : > { %v2020_v41 = vsel %vm1992_vm10, %v1987_v26, %v1740_v52 }
 0x268   : > { %v1804_v62 = vpop.permute.xlu0 %1803 }
 0x269   : > { %v1773_v42 = vpop.permute.xlu1 %1772  ;;  %v2084_v35 = vsel %vm2058_vm12, %v2051_v17, %v1804_v62 }
 0x26a   : > { %2856 = vmatprep.mubr.msk.bf16.mxu1 %vm2134_vm13, %v2084_v35  ;;  %v2053_v50 = vsel %vm2025_vm11, %v2020_v41, %v1773_v42 }
 0x26c   : > { %v1806_v58 = vpop.permute.xlu0 %1805 }
 0x26d   : > { %v1547_v27 = vpop.permute.xlu1 %1546  ;;  %v2086_v44 = vsel %vm2058_vm12, %v2053_v50, %v1806_v58 }
 0x26e   : > { %2857 = vmatmul.mubr.msk.bf16.gmra.mrb[24].mxu1 %vm2134_vm13, %v2086_v44  ;;  %v1856_v24 = vsel %vm1811_vm6, %v4222_v19, %v1547_v27 }
 0x270   : > { %v1595_v51 = vpop.permute.xlu0 %1594 }
 0x271   : > { %v1549_v1 = vpop.permute.xlu1 %1548  ;;  %v1890_v20 = vsel %vm1860_vm5, %v1856_v24, %v1595_v51 }
 0x272   : > { %v1859_v8 = vsel %vm1811_vm6, %v4239_v15, %v1549_v1 }
 0x274   : > { %v1643_v14 = vpop.permute.xlu0 %1642 }
 0x275   : > { %v1597_v10 = vpop.permute.xlu1 %1596  ;;  %v1923_v36 = vsel %vm1893_vm7, %v1890_v20, %v1643_v14 }
 0x276   : > { %v1892_v38 = vsel %vm1860_vm5, %v1859_v8, %v1597_v10 }
 0x278   : > { %v1676_v7 = vpop.permute.xlu0 %1675 }
 0x279   : > { %v1645_v59 = vpop.permute.xlu1 %1644  ;;  %v1956_v47 = vsel %vm1926_vm8, %v1923_v36, %v1676_v7 }
 0x27a   : > { %v1925_v45 = vsel %vm1893_vm7, %v1892_v38, %v1645_v59 }
 0x27c   : > { %v1709_v33 = vpop.permute.xlu0 %1708 }
 0x27d   : > { %v1678_v56 = vpop.permute.xlu1 %1677  ;;  %v1989_v37 = vsel %vm1959_vm9, %v1956_v47, %v1709_v33 }
 0x27e   : > { %v1958_v9 = vsel %vm1926_vm8, %v1925_v45, %v1678_v56 }
 0x280   : > { %v1742_v30 = vpop.permute.xlu0 %1741 }
 0x281   : > { %v1711_v23 = vpop.permute.xlu1 %1710  ;;  %v2834_v18 = vpop.f32.mrb[0].mxu1  ;;  %v2022_v63 = vsel %vm1992_vm10, %v1989_v37, %v1742_v30 }
 0x282   : > { %v2214_v55 = vadd.f32 %v2834_v18, %v4635_v16  ;;  %v2205_v11 = vpop.f32.mrb[1].mxu1  ;;  %v1991_v54 = vsel %vm1959_vm9, %v1958_v9, %v1711_v23 }
 0x283   : > { %v2206_v5 = vadd.f32 %v4635_v16, %v2205_v11  ;;  %v2835_v22 = vpop.f32.mrb[2].mxu1 }
 0x284   : > { %v1775_v29 = vpop.permute.xlu0 %1774  ;;  %v2334_v32 = vmax.f32 %v2214_v55, 0.0  ;;  %v2217_v40 = vadd.f32 %v2835_v22, %v4635_v16  ;;  %v2208_v13 = vpop.f32.mrb[3].mxu1 }
 0x285   : > { %v1744_v19 = vpop.permute.xlu1 %1743  ;;  %v2332_v60 = vmax.f32 %v2206_v5, 0.0  ;;  %v2209_v6 = vadd.f32 %v4635_v16, %v2208_v13  ;;  %v2055_v12 = vsel %vm2025_vm11, %v2022_v63, %v1775_v29 }
 0x286   : > { %v2714_v28 = vpack.c.bf16 %v2334_v32, %v2334_v32  ;;  %v2335_v0 = vmax.f32 %v2217_v40, 0.0  ;;  %v2024_v53 = vsel %vm1992_vm10, %v1991_v54, %v1744_v19 }
 0x287   : > { %v2712_v2 = vpack.c.bf16 %v2332_v60, %v2332_v60  ;;  %v2333_v25 = vmax.f32 %v2209_v6, 0.0 }
 0x288   : > { %v1808_v3 = vpop.permute.xlu0 %1807  ;;  %2495 = vst.msk [vmem:[%s4650_s29 + $0x8] sm:$0xf] %vm2492_vm14, %v2714_v28  ;;  %v2715_v57 = vpack.c.bf16 %v2335_v0, %v2335_v0 }
 0x289   : > { %v2088_v15 = vsel %vm2058_vm12, %v2055_v12, %v1808_v3  ;;  %v1777_v43 = vpop.permute.xlu1 %1776  ;;  %2493 = vst.msk [vmem:[%s4650_s29] sm:$0xf] %vm2492_vm14, %v2712_v2  ;;  %v2713_v34 = vpack.c.bf16 %v2333_v25, %v2333_v25 }
 0x28a   : > { %2860 = vmatprep.mubr.msk.bf16.mxu1 %vm2134_vm13, %v2088_v15  ;;  %2496 = vst.msk [vmem:[%s4650_s29 + $0xc] sm:$0xf] %vm2492_vm14, %v2715_v57  ;;  %v2057_v21 = vsel %vm2025_vm11, %v2024_v53, %v1777_v43 }
 0x28b   : > { %2494 = vst.msk [vmem:[%s4650_s29 + $0x4] sm:$0xf] %vm2492_vm14, %v2713_v34 }
 0x28d   : > { %v1810_v52 = vpop.permute.xlu1 %1809 }
 0x28e   : > { %v2090_v49 = vsel %vm2058_vm12, %v2057_v21, %v1810_v52 }
 0x28f   : > { %2861 = vmatmul.mubr.msk.bf16.gmra.mrb[28].mxu1 %vm2134_vm13, %v2090_v49 }
 0x2a1   : > { %v2838_v39 = vpop.f32.mrb[4].mxu1 }
 0x2a2   : > { %v2230_v4 = vadd.f32 %v2838_v39, %v4635_v16  ;;  %v2221_v46 = vpop.f32.mrb[5].mxu1 }
 0x2a3   : > { %v2222_v48 = vadd.f32 %v4635_v16, %v2221_v46  ;;  %v2839_v61 = vpop.f32.mrb[6].mxu1 }
 0x2a4   : > { %v2338_v17 = vmax.f32 %v2230_v4, 0.0  ;;  %v2233_v62 = vadd.f32 %v2839_v61, %v4635_v16  ;;  %v2224_v42 = vpop.f32.mrb[7].mxu1 }
 0x2a5   : > { %v2336_v31 = vmax.f32 %v2222_v48, 0.0  ;;  %v2225_v35 = vadd.f32 %v4635_v16, %v2224_v42 }
 0x2a6   : > { %v2718_v26 = vpack.c.bf16 %v2338_v17, %v2338_v17  ;;  %v2339_v41 = vmax.f32 %v2233_v62, 0.0 }
 0x2a7   : > { %v2716_v50 = vpack.c.bf16 %v2336_v31, %v2336_v31  ;;  %v2337_v58 = vmax.f32 %v2225_v35, 0.0 }
 0x2a8   : > { %2499 = vst.msk [vmem:[%s4650_s29 + $0x18] sm:$0xf] %vm2492_vm14, %v2718_v26  ;;  %v2719_v27 = vpack.c.bf16 %v2339_v41, %v2339_v41 }
 0x2a9   : > { %2497 = vst.msk [vmem:[%s4650_s29 + $0x10] sm:$0xf] %vm2492_vm14, %v2716_v50  ;;  %v2717_v44 = vpack.c.bf16 %v2337_v58, %v2337_v58 }
 0x2aa   : > { %2500 = vst.msk [vmem:[%s4650_s29 + $0x1c] sm:$0xf] %vm2492_vm14, %v2719_v27 }
 0x2ab   : > { %2498 = vst.msk [vmem:[%s4650_s29 + $0x14] sm:$0xf] %vm2492_vm14, %v2717_v44 }
 0x2c1   : > { %v2842_v51 = vpop.f32.mrb[8].mxu1 }
 0x2c2   : > { %v2246_v1 = vadd.f32 %v2842_v51, %v4635_v16  ;;  %v2237_v14 = vpop.f32.mrb[9].mxu1 }
 0x2c3   : > { %v2238_v10 = vadd.f32 %v4635_v16, %v2237_v14  ;;  %v2843_v7 = vpop.f32.mrb[10].mxu1 }
 0x2c4   : > { %v2342_v59 = vmax.f32 %v2246_v1, 0.0  ;;  %v2249_v33 = vadd.f32 %v2843_v7, %v4635_v16  ;;  %v2240_v56 = vpop.f32.mrb[11].mxu1 }
 0x2c5   : > { %v2340_v30 = vmax.f32 %v2238_v10, 0.0  ;;  %v2241_v23 = vadd.f32 %v4635_v16, %v2240_v56 }
 0x2c6   : > { %v2722_v24 = vpack.c.bf16 %v2342_v59, %v2342_v59  ;;  %v2343_v18 = vmax.f32 %v2249_v33, 0.0 }
 0x2c7   : > { %v2720_v20 = vpack.c.bf16 %v2340_v30, %v2340_v30  ;;  %v2341_v55 = vmax.f32 %v2241_v23, 0.0 }
 0x2c8   : > { %2503 = vst.msk [vmem:[%s4650_s29 + $0x28] sm:$0xf] %vm2492_vm14, %v2722_v24  ;;  %v2723_v11 = vpack.c.bf16 %v2343_v18, %v2343_v18 }
 0x2c9   : > { %2501 = vst.msk [vmem:[%s4650_s29 + $0x20] sm:$0xf] %vm2492_vm14, %v2720_v20  ;;  %v2721_v36 = vpack.c.bf16 %v2341_v55, %v2341_v55 }
 0x2ca   : > { %2504 = vst.msk [vmem:[%s4650_s29 + $0x2c] sm:$0xf] %vm2492_vm14, %v2723_v11 }
 0x2cb   : > { %2502 = vst.msk [vmem:[%s4650_s29 + $0x24] sm:$0xf] %vm2492_vm14, %v2721_v36 }
 0x2e1   : > { %v2846_v5 = vpop.f32.mrb[12].mxu1 }
 0x2e2   : > { %v2262_v22 = vadd.f32 %v2846_v5, %v4635_v16  ;;  %v2253_v29 = vpop.f32.mrb[13].mxu1 }
 0x2e3   : > { %v2254_v47 = vadd.f32 %v4635_v16, %v2253_v29  ;;  %v2847_v32 = vpop.f32.mrb[14].mxu1 }
 0x2e4   : > { %v2346_v40 = vmax.f32 %v2262_v22, 0.0  ;;  %v2265_v13 = vadd.f32 %v2847_v32, %v4635_v16  ;;  %v2256_v19 = vpop.f32.mrb[15].mxu1 }
 0x2e5   : > { %v2344_v37 = vmax.f32 %v2254_v47, 0.0  ;;  %v2257_v60 = vadd.f32 %v4635_v16, %v2256_v19 }
 0x2e6   : > { %v2726_v6 = vpack.c.bf16 %v2346_v40, %v2346_v40  ;;  %v2347_v8 = vmax.f32 %v2265_v13, 0.0 }
 0x2e7   : > { %v2724_v63 = vpack.c.bf16 %v2344_v37, %v2344_v37  ;;  %v2345_v28 = vmax.f32 %v2257_v60, 0.0 }
 0x2e8   : > { %2507 = vst.msk [vmem:[%s4650_s29 + $0x38] sm:$0xf] %vm2492_vm14, %v2726_v6  ;;  %v2727_v0 = vpack.c.bf16 %v2347_v8, %v2347_v8 }
 0x2e9   : > { %2505 = vst.msk [vmem:[%s4650_s29 + $0x30] sm:$0xf] %vm2492_vm14, %v2724_v63  ;;  %v2725_v38 = vpack.c.bf16 %v2345_v28, %v2345_v28 }
 0x2ea   : > { %2508 = vst.msk [vmem:[%s4650_s29 + $0x3c] sm:$0xf] %vm2492_vm14, %v2727_v0 }
 0x2eb   : > { %2506 = vst.msk [vmem:[%s4650_s29 + $0x34] sm:$0xf] %vm2492_vm14, %v2725_v38 }
 0x301   : > { %v2850_v2 = vpop.f32.mrb[16].mxu1 }
 0x302   : > { %v2278_v12 = vadd.f32 %v2850_v2, %v4635_v16  ;;  %v2269_v25 = vpop.f32.mrb[17].mxu1 }
 0x303   : > { %v2270_v3 = vadd.f32 %v4635_v16, %v2269_v25  ;;  %v2851_v45 = vpop.f32.mrb[18].mxu1 }
 0x304   : > { %v2350_v57 = vmax.f32 %v2278_v12, 0.0  ;;  %v2281_v15 = vadd.f32 %v2851_v45, %v4635_v16  ;;  %v2272_v43 = vpop.f32.mrb[19].mxu1 }
 0x305   : > { %v2348_v9 = vmax.f32 %v2270_v3, 0.0  ;;  %v2273_v34 = vadd.f32 %v4635_v16, %v2272_v43 }
 0x306   : > { %v2730_v54 = vpack.c.bf16 %v2350_v57, %v2350_v57  ;;  %v2351_v53 = vmax.f32 %v2281_v15, 0.0 }
 0x307   : > { %v2728_v21 = vpack.c.bf16 %v2348_v9, %v2348_v9  ;;  %v2349_v52 = vmax.f32 %v2273_v34, 0.0 }
 0x308   : > { %2511 = vst.msk [vmem:[%s4650_s29 + $0x48] sm:$0xf] %vm2492_vm14, %v2730_v54  ;;  %v2731_v49 = vpack.c.bf16 %v2351_v53, %v2351_v53 }
 0x309   : > { %2509 = vst.msk [vmem:[%s4650_s29 + $0x40] sm:$0xf] %vm2492_vm14, %v2728_v21  ;;  %v2729_v39 = vpack.c.bf16 %v2349_v52, %v2349_v52 }
 0x30a   : > { %2512 = vst.msk [vmem:[%s4650_s29 + $0x4c] sm:$0xf] %vm2492_vm14, %v2731_v49 }
 0x30b   : > { %2510 = vst.msk [vmem:[%s4650_s29 + $0x44] sm:$0xf] %vm2492_vm14, %v2729_v39 }
 0x321   : > { %v2854_v4 = vpop.f32.mrb[20].mxu1 }
 0x322   : > { %v2294_v46 = vadd.f32 %v2854_v4, %v4635_v16  ;;  %v2285_v48 = vpop.f32.mrb[21].mxu1 }
 0x323   : > { %v2286_v61 = vadd.f32 %v4635_v16, %v2285_v48  ;;  %v2855_v17 = vpop.f32.mrb[22].mxu1 }
 0x324   : > { %v2354_v62 = vmax.f32 %v2294_v46, 0.0  ;;  %v2297_v42 = vadd.f32 %v2855_v17, %v4635_v16  ;;  %v2288_v31 = vpop.f32.mrb[23].mxu1 }
 0x325   : > { %v2352_v35 = vmax.f32 %v2286_v61, 0.0  ;;  %v2289_v26 = vadd.f32 %v4635_v16, %v2288_v31 }
 0x326   : > { %v2734_v41 = vpack.c.bf16 %v2354_v62, %v2354_v62  ;;  %v2355_v50 = vmax.f32 %v2297_v42, 0.0 }
 0x327   : > { %v2732_v58 = vpack.c.bf16 %v2352_v35, %v2352_v35  ;;  %v2353_v27 = vmax.f32 %v2289_v26, 0.0 }
 0x328   : > { %2515 = vst.msk [vmem:[%s4650_s29 + $0x58] sm:$0xf] %vm2492_vm14, %v2734_v41  ;;  %v2735_v44 = vpack.c.bf16 %v2355_v50, %v2355_v50 }
 0x329   : > { %2513 = vst.msk [vmem:[%s4650_s29 + $0x50] sm:$0xf] %vm2492_vm14, %v2732_v58  ;;  %v2733_v51 = vpack.c.bf16 %v2353_v27, %v2353_v27 }
 0x32a   : > { %2516 = vst.msk [vmem:[%s4650_s29 + $0x5c] sm:$0xf] %vm2492_vm14, %v2735_v44 }
 0x32b   : > { %2514 = vst.msk [vmem:[%s4650_s29 + $0x54] sm:$0xf] %vm2492_vm14, %v2733_v51 }
 0x341   : > { %v2858_v1 = vpop.f32.mrb[24].mxu1 }
 0x342   : > { %v2310_v14 = vadd.f32 %v2858_v1, %v4635_v16  ;;  %v2301_v10 = vpop.f32.mrb[25].mxu1 }
 0x343   : > { %v2302_v7 = vadd.f32 %v4635_v16, %v2301_v10  ;;  %v2859_v59 = vpop.f32.mrb[26].mxu1 }
 0x344   : > { %v2358_v33 = vmax.f32 %v2310_v14, 0.0  ;;  %v2313_v56 = vadd.f32 %v2859_v59, %v4635_v16  ;;  %v2304_v30 = vpop.f32.mrb[27].mxu1 }
 0x345   : > { %v2356_v23 = vmax.f32 %v2302_v7, 0.0  ;;  %v2305_v24 = vadd.f32 %v4635_v16, %v2304_v30 }
 0x346   : > { %v2738_v18 = vpack.c.bf16 %v2358_v33, %v2358_v33  ;;  %v2359_v20 = vmax.f32 %v2313_v56, 0.0 }
 0x347   : > { %v2736_v55 = vpack.c.bf16 %v2356_v23, %v2356_v23  ;;  %v2357_v11 = vmax.f32 %v2305_v24, 0.0 }
 0x348   : > { %2519 = vst.msk [vmem:[%s4650_s29 + $0x68] sm:$0xf] %vm2492_vm14, %v2738_v18  ;;  %v2739_v36 = vpack.c.bf16 %v2359_v20, %v2359_v20 }
 0x349   : > { %2517 = vst.msk [vmem:[%s4650_s29 + $0x60] sm:$0xf] %vm2492_vm14, %v2736_v55  ;;  %v2737_v5 = vpack.c.bf16 %v2357_v11, %v2357_v11 }
 0x34a   : > { %2520 = vst.msk [vmem:[%s4650_s29 + $0x6c] sm:$0xf] %vm2492_vm14, %v2739_v36 }
 0x34b   : > { %2518 = vst.msk [vmem:[%s4650_s29 + $0x64] sm:$0xf] %vm2492_vm14, %v2737_v5 }
 0x362   : > { %v2862_v22 = vpop.f32.mrb[28].mxu1 }
 0x363   : > { %v2326_v29 = vadd.f32 %v2862_v22, %v4635_v16  ;;  %v2317_v47 = vpop.f32.mrb[29].mxu1 }
 0x364   : > { %v2318_v32 = vadd.f32 %v4635_v16, %v2317_v47  ;;  %v2863_v40 = vpop.f32.mrb[30].mxu1 }
 0x365   : > { %v2362_v13 = vmax.f32 %v2326_v29, 0.0  ;;  %v2329_v19 = vadd.f32 %v2863_v40, %v4635_v16  ;;  %v2320_v37 = vpop.f32.mrb[31].mxu1 }
 0x366   : > { %v2360_v60 = vmax.f32 %v2318_v32, 0.0  ;;  %v2321_v6 = vadd.f32 %v4635_v16, %v2320_v37 }
 0x367   : > { %v2742_v8 = vpack.c.bf16 %v2362_v13, %v2362_v13  ;;  %v2363_v63 = vmax.f32 %v2329_v19, 0.0 }
 0x368   : > { %v2740_v28 = vpack.c.bf16 %v2360_v60, %v2360_v60  ;;  %v2361_v0 = vmax.f32 %v2321_v6, 0.0 }
 0x369   : > { %2523 = vst.msk [vmem:[%s4650_s29 + $0x78] sm:$0xf] %vm2492_vm14, %v2742_v8  ;;  %v2743_v38 = vpack.c.bf16 %v2363_v63, %v2363_v63 }
 0x36a   : > { %2521 = vst.msk [vmem:[%s4650_s29 + $0x70] sm:$0xf] %vm2492_vm14, %v2740_v28  ;;  %v2741_v2 = vpack.c.bf16 %v2361_v0, %v2361_v0 }
 0x36b   : > { %2524 = vst.msk [vmem:[%s4650_s29 + $0x7c] sm:$0xf] %vm2492_vm14, %v2743_v38 }
 0x36c   : > { %2522 = vst.msk [vmem:[%s4650_s29 + $0x74] sm:$0xf] %vm2492_vm14, %v2741_v2 }
 0x36d PF: > { %s16_s23 = sadd.s32 1, %s2957_s23   ;;  %s4930_s21 = smov %s2953_s22 }
 0x36e   : > { %p13_p5 = scmp.ge.s32.totalorder %s16_s23, 4   ;;  %s4931_s22 = smov %s4933_s24 }
 0x370   :  { %15 = sbr.rel (!%p13_p5) target bundleno = 2 (0x2), region = 76 }

</bundles_post_ra>
